<compile_context>
chip_gen: v7x
topology: tpu7x:2x2x1
jax: 0.10.0
libtpu: 0.0.40
codegen_flags: <defaults>
</compile_context>

<pallas_src>
import functools

import jax
import jax.numpy as jnp
from jax.experimental import pallas as pl
from jax.experimental.pallas import tpu as pltpu

LANE = 128
_VMEM_LIMIT = 32 * 1024 * 1024  # safe scoped-VMEM budget on v5e/v6e/v7x


# ----------------------------------------------------------------------------
# small static helpers (all shape math is on Python ints, trace-time only)
# ----------------------------------------------------------------------------
def _ceil_to(x, m):
    return (x + m - 1) // m * m


def _pick_tile(dim, prefs):
    for p in prefs:
        if dim >= p and dim % p == 0:
            return p
    return dim


def _pad2(x, rows, cols, dtype):
    x = x.astype(dtype)
    if x.shape == (rows, cols):
        return x
    return jnp.zeros((rows, cols), dtype).at[: x.shape[0], : x.shape[1]].set(x)


# ----------------------------------------------------------------------------
# Kernel 1: normalizer  (x - mean) * inv_std      (inv_std precomputed outside)
# ----------------------------------------------------------------------------
def _normalize_kernel(x_ref, mean_ref, inv_ref, o_ref):
    o_ref[...] = ((x_ref[...] - mean_ref[...]) * inv_ref[...]).astype(o_ref.dtype)


def normalize(audio, mean, inv_std):
    B, T, D = audio.shape
    M = B * T
    x2 = audio.reshape(M, D).astype(jnp.float32)
    tm = _pick_tile(M, (512, 256, 128, 64, 32, 16, 8)) if M % 8 == 0 else M
    out = pl.pallas_call(
        _normalize_kernel,
        grid=(M // tm,),
        in_specs=[
            pl.BlockSpec((tm, D), lambda i: (i, 0)),
            pl.BlockSpec((1, D), lambda i: (0, 0)),
            pl.BlockSpec((1, D), lambda i: (0, 0)),
        ],
        out_specs=pl.BlockSpec((tm, D), lambda i: (i, 0)),
        out_shape=jax.ShapeDtypeStruct((M, D), jnp.bfloat16),
        compiler_params=pltpu.CompilerParams(
            dimension_semantics=("parallel",), vmem_limit_bytes=_VMEM_LIMIT),
    )(x2, mean.reshape(1, D).astype(jnp.float32),
      inv_std.reshape(1, D).astype(jnp.float32))
    return out.reshape(B, T, D)


# ----------------------------------------------------------------------------
# Kernel 2: tiled matmul + bias (+ optional relu): bf16 MXU inputs, f32 acc.
# Used for the conv (im2col) matmuls and the fused BiGRU input projection.
# ----------------------------------------------------------------------------
def _matmul_kernel(a_ref, b_ref, bias_ref, o_ref, acc_ref, *, act):
    @pl.when(pl.program_id(2) == 0)
    def _init():
        acc_ref[...] = jnp.zeros_like(acc_ref)

    acc_ref[...] += jnp.dot(a_ref[...], b_ref[...],
                            preferred_element_type=jnp.float32)

    @pl.when(pl.program_id(2) == pl.num_programs(2) - 1)
    def _finalize():
        acc = acc_ref[...] + bias_ref[...]
        if act == "relu":
            acc = jnp.maximum(acc, 0.0)
        o_ref[...] = acc.astype(o_ref.dtype)


def matmul_bias_act(a, b, bias, act="none", out_dtype=jnp.float32):
    """act(A @ B + bias); A:(M,K), B:(K,N), bias:(N,).  M/N/K tiled and padded."""
    M, K = a.shape
    K2, N = b.shape
    assert K == K2 and bias.shape == (N,)

    Mp = _ceil_to(M, 8) if M <= 256 else _ceil_to(M, 256)
    Np = _ceil_to(N, LANE) if N <= 512 else _ceil_to(N, 256)
    if K > 512:
        Kp, tk = _ceil_to(K, 512), 512
    else:
        Kp, tk = K, K  # TODO(synk): conv1 has K=9 -> MXU is mostly idle for that call.
    tm = _pick_tile(Mp, (256, 128, 64, 32, 16, 8))
    tn = _pick_tile(Np, (512, 256, 128))

    a_p = _pad2(a, Mp, Kp, jnp.bfloat16)
    b_p = _pad2(b, Kp, Np, jnp.bfloat16)
    bias_p = _pad2(bias.reshape(1, N), 1, Np, jnp.float32)

    out = pl.pallas_call(
        functools.partial(_matmul_kernel, act=act),
        grid=(Mp // tm, Np // tn, Kp // tk),
        in_specs=[
            pl.BlockSpec((tm, tk), lambda i, j, k: (i, k)),
            pl.BlockSpec((tk, tn), lambda i, j, k: (k, j)),
            pl.BlockSpec((1, tn), lambda i, j, k: (0, j)),
        ],
        out_specs=pl.BlockSpec((tm, tn), lambda i, j, k: (i, j)),
        out_shape=jax.ShapeDtypeStruct((Mp, Np), out_dtype),
        scratch_shapes=[pltpu.VMEM((tm, tn), jnp.float32)],
        compiler_params=pltpu.CompilerParams(
            dimension_semantics=("parallel", "parallel", "arbitrary"),
            vmem_limit_bytes=_VMEM_LIMIT),
    )(a_p, b_p, bias_p)
    if (Mp, Np) != (M, N):
        out = out[:M, :N]
    return out


# ----------------------------------------------------------------------------
# Kernel 3: fused bidirectional GRU recurrence (PyTorch gate semantics).
# grid = (2 directions ["parallel"], T time steps ["arbitrary"]).
# gx[t] = x_t @ W_ih^T + b_ih (+ folded b_hr/b_hz) is precomputed by the matmul
# kernel and streamed one time-block per grid step; hidden state lives in VMEM
# scratch and persists across the time axis; the backward direction reads gate
# blocks and writes output blocks at time index T-1-t via the index_map.
# Gate segments / outputs are padded to H_pad (multiple of 128) => lane-dense.
# ----------------------------------------------------------------------------
def _bigru_kernel(gx_ref, whh_ref, bhhn_ref, o_ref, h_ref, *, hidden_pad):
    t = pl.program_id(1)

    @pl.when(t == 0)
    def _init():
        h_ref[...] = jnp.zeros_like(h_ref)

    Hp = hidden_pad
    h = h_ref[...]                                  # (B, Hp) f32
    gx = gx_ref[0]                                  # (B, 3*Hp) f32 (bias applied)
    gh = jnp.dot(h.astype(jnp.bfloat16), whh_ref[0],
                 preferred_element_type=jnp.float32)  # (B, 3*Hp)
    r = jax.nn.sigmoid(gx[:, 0:Hp] + gh[:, 0:Hp])
    z = jax.nn.sigmoid(gx[:, Hp:2 * Hp] + gh[:, Hp:2 * Hp])
    n = jnp.tanh(gx[:, 2 * Hp:3 * Hp] + r * (gh[:, 2 * Hp:3 * Hp] + bhhn_ref[0]))
    h_new = (1.0 - z) * n + z * h
    h_ref[...] = h_new
    o_ref[0] = h_new.astype(o_ref.dtype)


def bidirectional_gru(gx, whh, bhh_n, hidden_pad):
    """gx:(T,B,6*Hp) f32, whh:(2,Hp,3*Hp) bf16, bhh_n:(2,1,Hp) f32 -> (T,B,2*Hp)."""
    T, B, G = gx.shape
    Hp = hidden_pad
    assert G == 6 * Hp

    def tmap(d, t):  # forward walks t = 0..T-1; backward walks T-1..0
        return (1 - d) * t + d * (T - 1 - t)

    return pl.pallas_call(
        functools.partial(_bigru_kernel, hidden_pad=Hp),
        grid=(2, T),
        in_specs=[
            pl.BlockSpec((1, B, 3 * Hp), lambda d, t: (tmap(d, t), 0, d)),
            pl.BlockSpec((1, Hp, 3 * Hp), lambda d, t: (d, 0, 0)),
            pl.BlockSpec((1, 1, Hp), lambda d, t: (d, 0, 0)),
        ],
        out_specs=pl.BlockSpec((1, B, Hp), lambda d, t: (tmap(d, t), 0, d)),
        out_shape=jax.ShapeDtypeStruct((T, B, 2 * Hp), jnp.float32),
        scratch_shapes=[pltpu.VMEM((B, Hp), jnp.float32)],
        compiler_params=pltpu.CompilerParams(
            dimension_semantics=("parallel", "arbitrary"),
            vmem_limit_bytes=_VMEM_LIMIT),
    )(gx, whh, bhh_n)


# ----------------------------------------------------------------------------
# Kernel 4: FC to (padded) vocab + softmax over dim 2, fused.  Only M is tiled
# (softmax needs the full vocab row); padded vocab columns masked to -inf.
# ----------------------------------------------------------------------------
def _fc_softmax_kernel(a_ref, w_ref, bias_ref, o_ref, *, n_valid):
    acc = jnp.dot(a_ref[...], w_ref[...], preferred_element_type=jnp.float32)
    acc = acc + bias_ref[...]
    col = jax.lax.broadcasted_iota(jnp.int32, acc.shape, 1)
    acc = jnp.where(col < n_valid, acc, -1e30)
    m = jnp.max(acc, axis=-1, keepdims=True)
    e = jnp.exp(acc - m)
    s = jnp.sum(e, axis=-1, keepdims=True)
    r0 = pl.reciprocal(s, approx=True)
    inv = r0 * (2.0 - s * r0)            # one Newton step -> near-exact 1/s
    o_ref[...] = (e * inv).astype(o_ref.dtype)


def fc_softmax(a, w, bias, n_valid):
    M, K = a.shape
    K2, Np = w.shape
    assert K == K2 and Np % LANE == 0
    Mp = _ceil_to(M, 8) if M <= 256 else _ceil_to(M, 256)
    tm = _pick_tile(Mp, (256, 128, 64, 32, 16, 8))
    a_p = _pad2(a, Mp, K, jnp.bfloat16)
    out = pl.pallas_call(
        functools.partial(_fc_softmax_kernel, n_valid=n_valid),
        grid=(Mp // tm,),
        in_specs=[
            pl.BlockSpec((tm, K), lambda i: (i, 0)),
            pl.BlockSpec((K, Np), lambda i: (0, 0)),
            pl.BlockSpec((1, Np), lambda i: (0, 0)),
        ],
        out_specs=pl.BlockSpec((tm, Np), lambda i: (i, 0)),
        out_shape=jax.ShapeDtypeStruct((Mp, Np), jnp.float32),
        compiler_params=pltpu.CompilerParams(
            dimension_semantics=("parallel",), vmem_limit_bytes=_VMEM_LIMIT),
    )(a_p, w.astype(jnp.bfloat16), bias.reshape(1, Np).astype(jnp.float32))
    return out[:M] if Mp != M else out


# ----------------------------------------------------------------------------
# Glue: im2col patch extraction (memory movement only; MACs happen in Pallas).
# ----------------------------------------------------------------------------
def im2col(x, k, stride, pad):
    B, H, W, C = x.shape
    xp = jnp.pad(x, ((0, 0), (pad, pad), (pad, pad), (0, 0)))
    Ho = (H + 2 * pad - k) // stride + 1
    Wo = (W + 2 * pad - k) // stride + 1
    cols = []
    for di in range(k):
        for dj in range(k):
            cols.append(xp[:, di:di + stride * Ho:stride, dj:dj + stride * Wo:stride, :])
    patches = jnp.concatenate(cols, axis=-1)  # (B, Ho, Wo, k*k*C)
    return patches, Ho, Wo


def conv2d_relu(x, w, b, stride=2, pad=1):
    patches, Ho, Wo = im2col(x, 3, stride, pad)
    B = x.shape[0]
    Cout = w.shape[1]
    a = patches.reshape(B * Ho * Wo, -1)
    y = matmul_bias_act(a, w, b, act="relu", out_dtype=jnp.bfloat16)
    return y.reshape(B, Ho, Wo, Cout), Ho, Wo


# ----------------------------------------------------------------------------
# Full forward (Normalizer -> conv subsample -> BiGRU -> FC -> Softmax(dim=2))
# ----------------------------------------------------------------------------
def deepspeech2_export_forward(ep, audio, audio_len, *, dims):
    B = audio.shape[0]
    Hp, V = dims["hidden_pad"], dims["vocab"]

    # 1) Normalizer
    x = normalize(audio, ep["feat_mean"], ep["inv_std"])          # (B,T,D) bf16
    x = x[..., None]                                              # NHWC, C=1

    # 2) Conv subsampling (two Conv2d k=3 s=2 p=1 + ReLU)
    x, _, _ = conv2d_relu(x, ep["conv1_w"], ep["conv1_b"])
    x, T2, D2 = conv2d_relu(x, ep["conv2_w"], ep["conv2_b"])
    F = D2 * x.shape[-1]

    # 3) BiGRU: one fused fwd|bwd input projection + one recurrent kernel
    xt = jnp.transpose(x.reshape(B, T2, F), (1, 0, 2)).reshape(T2 * B, F)
    gx = matmul_bias_act(xt, ep["wih_cat"], ep["bih_cat"], out_dtype=jnp.float32)
    gx = gx.reshape(T2, B, 6 * Hp)
    h = bidirectional_gru(gx, ep["whh"], ep["bhh_n"], Hp)         # (T2, B, 2*Hp)

    # 4) FC + masked softmax over vocab (padded columns get probability 0)
    probs = fc_softmax(h.reshape(T2 * B, 2 * Hp), ep["fc_w"], ep["fc_b"], V)
    output = jnp.transpose(probs.reshape(T2, B, -1), (1, 0, 2))[..., :V]

    def conv_len(n):  # length after a (k=3, s=2, p=1) conv along time
        return (n + 2 * 1 - 3) // 2 + 1

    output_lens = conv_len(conv_len(audio_len)).astype(jnp.int32)
    return output, output_lens


# ----------------------------------------------------------------------------
# Parameter construction (logical sizes) + export-layout preparation (padding
# H/vocab to 128 multiples, fusing fwd/bwd weights, folding b_hr/b_hz into b_ih).
# ----------------------------------------------------------------------------
def _pad_gate_cols(w, H, Hp):
    """Zero-pad each of the 3 GRU gate segments along the last axis: H -> Hp."""
    if H == Hp:
        return w
    lead = w.shape[:-1]
    w3 = w.reshape(lead + (3, H))
    out = jnp.zeros(lead + (3, Hp), w.dtype).at[..., :H].set(w3)
    return out.reshape(lead + (3 * Hp,))


def make_params(feat_dim, c1, c2, hidden, vocab, key):
    ks = jax.random.split(key, 14)
    s = 0.1
    d1 = (feat_dim + 2 - 3) // 2 + 1
    d2 = (d1 + 2 - 3) // 2 + 1
    feat_after = d2 * c2
    p = {
        "feat_mean": 0.1 * jnp.arange(feat_dim, dtype=jnp.float32),
        "feat_std": 1.0 + 0.05 * jnp.arange(feat_dim, dtype=jnp.float32),
        "conv1_w": s * jax.random.normal(ks[0], (9 * 1, c1), jnp.float32),
        "conv1_b": s * jax.random.normal(ks[1], (c1,), jnp.float32),
        "conv2_w": s * jax.random.normal(ks[2], (9 * c1, c2), jnp.float32),
        "conv2_b": s * jax.random.normal(ks[3], (c2,), jnp.float32),
        "wih_f": s * jax.random.normal(ks[4], (feat_after, 3 * hidden), jnp.float32),
        "bih_f": s * jax.random.normal(ks[5], (3 * hidden,), jnp.float32),
        "whh_f": s * jax.random.normal(ks[6], (hidden, 3 * hidden), jnp.float32),
        "bhh_f": s * jax.random.normal(ks[7], (3 * hidden,), jnp.float32),
        "wih_b": s * jax.random.normal(ks[8], (feat_after, 3 * hidden), jnp.float32),
        "bih_b": s * jax.random.normal(ks[9], (3 * hidden,), jnp.float32),
        "whh_b": s * jax.random.normal(ks[10], (hidden, 3 * hidden), jnp.float32),
        "bhh_b": s * jax.random.normal(ks[11], (3 * hidden,), jnp.float32),
        "fc_w": s * jax.random.normal(ks[12], (2 * hidden, vocab), jnp.float32),
        "fc_b": s * jax.random.normal(ks[13], (vocab,), jnp.float32),
        "hidden": hidden,
        "vocab": vocab,
    }
    return p


def prepare_export_params(p):
    H, V = p["hidden"], p["vocab"]
    Hp = _ceil_to(max(H, LANE), LANE)
    Vp = _ceil_to(max(V, LANE), LANE)
    dims = {"hidden": H, "hidden_pad": Hp, "vocab": V, "vocab_pad": Vp}

    def fold_bias(bih, bhh):
        # PyTorch GRU: b_hr / b_hz fold into the input-projection bias;
        # b_hn must stay inside the r*(...) term (kept separately as bhh_n).
        return jnp.concatenate([bih[0:H] + bhh[0:H],
                                bih[H:2 * H] + bhh[H:2 * H],
                                bih[2 * H:3 * H]])

    def pad_whh(w):
        w = _pad_gate_cols(w, H, Hp)
        return jnp.zeros((Hp, 3 * Hp), jnp.float32).at[:H].set(w)

    fc_w = (jnp.zeros((2 * Hp, Vp), jnp.float32)
            .at[0:H, :V].set(p["fc_w"][0:H])
            .at[Hp:Hp + H, :V].set(p["fc_w"][H:2 * H]))

    ep = {
        "feat_mean": p["feat_mean"].astype(jnp.float32),
        "inv_std": (1.0 / (p["feat_std"] + 1e-20)).astype(jnp.float32),
        "conv1_w": p["conv1_w"], "conv1_b": p["conv1_b"],
        "conv2_w": p["conv2_w"], "conv2_b": p["conv2_b"],
        "wih_cat": jnp.concatenate([_pad_gate_cols(p["wih_f"], H, Hp),
                                    _pad_gate_cols(p["wih_b"], H, Hp)], axis=-1),
        "bih_cat": jnp.concatenate(
            [_pad_gate_cols(fold_bias(p["bih_f"], p["bhh_f"]), H, Hp),
             _pad_gate_cols(fold_bias(p["bih_b"], p["bhh_b"]), H, Hp)], axis=-1),
        "whh": jnp.stack([pad_whh(p["whh_f"]),
                          pad_whh(p["whh_b"])]).astype(jnp.bfloat16),
        "bhh_n": jnp.stack(
            [jnp.zeros((Hp,), jnp.float32).at[:H].set(p["bhh_f"][2 * H:3 * H]),
             jnp.zeros((Hp,), jnp.float32).at[:H].set(p["bhh_b"][2 * H:3 * H])]
        )[:, None, :],
        "fc_w": fc_w,
        "fc_b": jnp.zeros((Vp,), jnp.float32).at[:V].set(p["fc_b"]),
    }
    return ep, dims


if __name__ == "__main__":
    B, T, D = 2, 16, 16        # batch, time, feature_dim
    C1, C2 = 8, 8              # conv channels
    HIDDEN, VOCAB = 32, 40

    key = jax.random.PRNGKey(0)
    k_audio, k_params = jax.random.split(key)
    audio = jax.random.normal(k_audio, (B, T, D), jnp.float32)
    audio_len = jnp.array([T, T - 4], dtype=jnp.int32)

    params = make_params(D, C1, C2, HIDDEN, VOCAB, k_params)
    ep, dims = prepare_export_params(params)

    fwd = jax.jit(functools.partial(deepspeech2_export_forward, dims=dims))
    output, output_lens = jax.block_until_ready(fwd(ep, audio, audio_len))

    # sanity: shapes, and softmax over dim 2 sums to 1 over the true vocab
    assert output.shape == (B, T // 4, VOCAB), output.shape
    assert jnp.allclose(jnp.sum(output, axis=2), 1.0, atol=1e-3)
    assert output_lens.shape == (B,)

    print("KERNEL_OK")
</pallas_src>

<mosaic_0001>
module attributes {stable_mosaic.version = 11 : i64} {
  func.func @_normalize_kernel(%arg0: i32, %arg1: memref<32x16xf32, #tpu.memory_space<vmem>>, %arg2: memref<1x16xf32, #tpu.memory_space<vmem>>, %arg3: memref<1x16xf32, #tpu.memory_space<vmem>>, %arg4: memref<32x16xbf16, #tpu.memory_space<vmem>>) attributes {dimension_semantics = [#tpu.dimension_semantics<parallel>], iteration_bounds = array<i64: 1>, scalar_prefetch = 0 : i64, scratch_operands = 0 : i64, tpu.core_type = #tpu.core_type<tc>, window_params = [{transform_indices = @transform_0, window_bounds = array<i64: 32, 16>}, {pipeline_mode = #tpu.pipeline_mode<synchronous>, transform_indices = @transform_1, window_bounds = array<i64: 1, 16>}, {pipeline_mode = #tpu.pipeline_mode<synchronous>, transform_indices = @transform_2, window_bounds = array<i64: 1, 16>}, {transform_indices = @transform_3, window_bounds = array<i64: 32, 16>}]} {
    %c0 = arith.constant 0 : index
    %c0_0 = arith.constant 0 : index
    %0 = vector.load %arg1[%c0, %c0_0] : memref<32x16xf32, #tpu.memory_space<vmem>>, vector<32x16xf32>
    %c0_1 = arith.constant 0 : index
    %c0_2 = arith.constant 0 : index
    %1 = vector.load %arg2[%c0_1, %c0_2] : memref<1x16xf32, #tpu.memory_space<vmem>>, vector<1x16xf32>
    %2 = vector.broadcast %1 : vector<1x16xf32> to vector<32x16xf32>
    %3 = arith.subf %0, %2 : vector<32x16xf32>
    %c0_3 = arith.constant 0 : index
    %c0_4 = arith.constant 0 : index
    %4 = vector.load %arg3[%c0_3, %c0_4] : memref<1x16xf32, #tpu.memory_space<vmem>>, vector<1x16xf32>
    %5 = vector.broadcast %4 : vector<1x16xf32> to vector<32x16xf32>
    %6 = arith.mulf %3, %5 : vector<32x16xf32>
    %7 = arith.truncf %6 : vector<32x16xf32> to vector<32x16xbf16>
    %c0_5 = arith.constant 0 : index
    %c0_6 = arith.constant 0 : index
    %8 = vector.load %arg4[%c0_5, %c0_6] : memref<32x16xbf16, #tpu.memory_space<vmem>>, vector<32x16xbf16>
    tpu.vector_store %arg4[%c0_5, %c0_6], %7 {strides = array<i32>} : memref<32x16xbf16, #tpu.memory_space<vmem>>, vector<32x16xbf16>,
    return
  }
  func.func @transform_0(%arg0: i32) -> (i32, i32) {
    %c0_i32 = arith.constant 0 : i32
    %c0_i32_0 = arith.constant 0 : i32
    return %arg0, %c0_i32 : i32, i32
  }
  func.func @transform_1(%arg0: i32) -> (i32, i32) {
    %c0_i32 = arith.constant 0 : i32
    %c0_i32_0 = arith.constant 0 : i32
    %c0_i32_1 = arith.constant 0 : i32
    return %c0_i32, %c0_i32_0 : i32, i32
  }
  func.func @transform_2(%arg0: i32) -> (i32, i32) {
    %c0_i32 = arith.constant 0 : i32
    %c0_i32_0 = arith.constant 0 : i32
    %c0_i32_1 = arith.constant 0 : i32
    return %c0_i32, %c0_i32_0 : i32, i32
  }
  func.func @transform_3(%arg0: i32) -> (i32, i32) {
    %c0_i32 = arith.constant 0 : i32
    %c0_i32_0 = arith.constant 0 : i32
    return %arg0, %c0_i32 : i32, i32
  }
}

module attributes {stable_mosaic.version = 11 : i64} {
  func.func @_matmul_kernel(%arg0: i32, %arg1: i32, %arg2: i32, %arg3: memref<128x9xbf16, #tpu.memory_space<vmem>>, %arg4: memref<9x128xbf16, #tpu.memory_space<vmem>>, %arg5: memref<1x128xf32, #tpu.memory_space<vmem>>, %arg6: memref<128x128xbf16, #tpu.memory_space<vmem>>, %arg7: memref<128x128xf32, #tpu.memory_space<vmem>>) attributes {dimension_semantics = [#tpu.dimension_semantics<parallel>, #tpu.dimension_semantics<parallel>, #tpu.dimension_semantics<arbitrary>], iteration_bounds = array<i64: 1, 1, 1>, scalar_prefetch = 0 : i64, scratch_operands = 1 : i64, tpu.core_type = #tpu.core_type<tc>, window_params = [{transform_indices = @transform_0, window_bounds = array<i64: 128, 9>}, {transform_indices = @transform_1, window_bounds = array<i64: 9, 128>}, {transform_indices = @transform_2, window_bounds = array<i64: 1, 128>}, {transform_indices = @transform_3, window_bounds = array<i64: 128, 128>}]} {
    %c0_i32 = arith.constant 0 : i32
    %0 = arith.cmpi eq, %arg2, %c0_i32 : i32
    %1 = arith.extui %0 : i1 to i32
    %c0_i32_0 = arith.constant 0 : i32
    %2 = arith.cmpi ne, %1, %c0_i32_0 : i32
    scf.if %2 {
      %cst_10 = arith.constant 0.000000e+00 : f32
      %12 = vector.broadcast %cst_10 : f32 to vector<128x128xf32>
      %c0_11 = arith.constant 0 : index
      %c0_12 = arith.constant 0 : index
      %13 = vector.load %arg7[%c0_11, %c0_12] : memref<128x128xf32, #tpu.memory_space<vmem>>, vector<128x128xf32>
      tpu.vector_store %arg7[%c0_11, %c0_12], %12 {strides = array<i32>} : memref<128x128xf32, #tpu.memory_space<vmem>>, vector<128x128xf32>,
    } else {
    }
    %c0 = arith.constant 0 : index
    %c0_1 = arith.constant 0 : index
    %3 = vector.load %arg7[%c0, %c0_1] : memref<128x128xf32, #tpu.memory_space<vmem>>, vector<128x128xf32>
    %c0_2 = arith.constant 0 : index
    %c0_3 = arith.constant 0 : index
    %4 = vector.load %arg3[%c0_2, %c0_3] : memref<128x9xbf16, #tpu.memory_space<vmem>>, vector<128x9xbf16>
    %c0_4 = arith.constant 0 : index
    %c0_5 = arith.constant 0 : index
    %5 = vector.load %arg4[%c0_4, %c0_5] : memref<9x128xbf16, #tpu.memory_space<vmem>>, vector<9x128xbf16>
    %cst = arith.constant dense<0.000000e+00> : vector<128x128xf32>
    %6 = tpu.matmul %4, %5, %cst {dimension_numbers = #tpu.dot_dimension_numbers<[1], [0], [0], [1], [0, 0, 1, 1], [], []>} : vector<128x9xbf16>, vector<9x128xbf16>, vector<128x128xf32> -> vector<128x128xf32>
    %7 = arith.addf %3, %6 : vector<128x128xf32>
    %c0_6 = arith.constant 0 : index
    %c0_7 = arith.constant 0 : index
    %8 = vector.load %arg7[%c0_6, %c0_7] : memref<128x128xf32, #tpu.memory_space<vmem>>, vector<128x128xf32>
    tpu.vector_store %arg7[%c0_6, %c0_7], %7 {strides = array<i32>} : memref<128x128xf32, #tpu.memory_space<vmem>>, vector<128x128xf32>,
    %c0_i32_8 = arith.constant 0 : i32
    %9 = arith.cmpi eq, %arg2, %c0_i32_8 : i32
    %10 = arith.extui %9 : i1 to i32
    %c0_i32_9 = arith.constant 0 : i32
    %11 = arith.cmpi ne, %10, %c0_i32_9 : i32
    scf.if %11 {
      %c0_10 = arith.constant 0 : index
      %c0_11 = arith.constant 0 : index
      %12 = vector.load %arg7[%c0_10, %c0_11] : memref<128x128xf32, #tpu.memory_space<vmem>>, vector<128x128xf32>
      %c0_12 = arith.constant 0 : index
      %c0_13 = arith.constant 0 : index
      %13 = vector.load %arg5[%c0_12, %c0_13] : memref<1x128xf32, #tpu.memory_space<vmem>>, vector<1x128xf32>
      %14 = vector.broadcast %13 : vector<1x128xf32> to vector<128x128xf32>
      %15 = arith.addf %12, %14 : vector<128x128xf32>
      %cst_14 = arith.constant 0.000000e+00 : f32
      %16 = vector.broadcast %cst_14 : f32 to vector<128x128xf32>
      %17 = arith.maximumf %15, %16 : vector<128x128xf32>
      %18 = arith.truncf %17 : vector<128x128xf32> to vector<128x128xbf16>
      %c0_15 = arith.constant 0 : index
      %c0_16 = arith.constant 0 : index
      %19 = vector.load %arg6[%c0_15, %c0_16] : memref<128x128xbf16, #tpu.memory_space<vmem>>, vector<128x128xbf16>
      tpu.vector_store %arg6[%c0_15, %c0_16], %18 {strides = array<i32>} : memref<128x128xbf16, #tpu.memory_space<vmem>>, vector<128x128xbf16>,
    } else {
    }
    return
  }
  func.func @transform_0(%arg0: i32, %arg1: i32, %arg2: i32) -> (i32, i32) {
    %c0_i32 = arith.constant 0 : i32
    return %arg0, %arg2 : i32, i32
  }
  func.func @transform_1(%arg0: i32, %arg1: i32, %arg2: i32) -> (i32, i32) {
    %c0_i32 = arith.constant 0 : i32
    return %arg2, %arg1 : i32, i32
  }
  func.func @transform_2(%arg0: i32, %arg1: i32, %arg2: i32) -> (i32, i32) {
    %c0_i32 = arith.constant 0 : i32
    %c0_i32_0 = arith.constant 0 : i32
    return %c0_i32, %arg1 : i32, i32
  }
  func.func @transform_3(%arg0: i32, %arg1: i32, %arg2: i32) -> (i32, i32) {
    %c0_i32 = arith.constant 0 : i32
    return %arg0, %arg1 : i32, i32
  }
}

module attributes {stable_mosaic.version = 11 : i64} {
  func.func @_matmul_kernel(%arg0: i32, %arg1: i32, %arg2: i32, %arg3: memref<32x72xbf16, #tpu.memory_space<vmem>>, %arg4: memref<72x128xbf16, #tpu.memory_space<vmem>>, %arg5: memref<1x128xf32, #tpu.memory_space<vmem>>, %arg6: memref<32x128xbf16, #tpu.memory_space<vmem>>, %arg7: memref<32x128xf32, #tpu.memory_space<vmem>>) attributes {dimension_semantics = [#tpu.dimension_semantics<parallel>, #tpu.dimension_semantics<parallel>, #tpu.dimension_semantics<arbitrary>], iteration_bounds = array<i64: 1, 1, 1>, scalar_prefetch = 0 : i64, scratch_operands = 1 : i64, tpu.core_type = #tpu.core_type<tc>, window_params = [{transform_indices = @transform_0, window_bounds = array<i64: 32, 72>}, {transform_indices = @transform_1, window_bounds = array<i64: 72, 128>}, {transform_indices = @transform_2, window_bounds = array<i64: 1, 128>}, {transform_indices = @transform_3, window_bounds = array<i64: 32, 128>}]} {
    %c0_i32 = arith.constant 0 : i32
    %0 = arith.cmpi eq, %arg2, %c0_i32 : i32
    %1 = arith.extui %0 : i1 to i32
    %c0_i32_0 = arith.constant 0 : i32
    %2 = arith.cmpi ne, %1, %c0_i32_0 : i32
    scf.if %2 {
      %cst_10 = arith.constant 0.000000e+00 : f32
      %12 = vector.broadcast %cst_10 : f32 to vector<32x128xf32>
      %c0_11 = arith.constant 0 : index
      %c0_12 = arith.constant 0 : index
      %13 = vector.load %arg7[%c0_11, %c0_12] : memref<32x128xf32, #tpu.memory_space<vmem>>, vector<32x128xf32>
      tpu.vector_store %arg7[%c0_11, %c0_12], %12 {strides = array<i32>} : memref<32x128xf32, #tpu.memory_space<vmem>>, vector<32x128xf32>,
    } else {
    }
    %c0 = arith.constant 0 : index
    %c0_1 = arith.constant 0 : index
    %3 = vector.load %arg7[%c0, %c0_1] : memref<32x128xf32, #tpu.memory_space<vmem>>, vector<32x128xf32>
    %c0_2 = arith.constant 0 : index
    %c0_3 = arith.constant 0 : index
    %4 = vector.load %arg3[%c0_2, %c0_3] : memref<32x72xbf16, #tpu.memory_space<vmem>>, vector<32x72xbf16>
    %c0_4 = arith.constant 0 : index
    %c0_5 = arith.constant 0 : index
    %5 = vector.load %arg4[%c0_4, %c0_5] : memref<72x128xbf16, #tpu.memory_space<vmem>>, vector<72x128xbf16>
    %cst = arith.constant dense<0.000000e+00> : vector<32x128xf32>
    %6 = tpu.matmul %4, %5, %cst {dimension_numbers = #tpu.dot_dimension_numbers<[1], [0], [0], [1], [0, 0, 1, 1], [], []>} : vector<32x72xbf16>, vector<72x128xbf16>, vector<32x128xf32> -> vector<32x128xf32>
    %7 = arith.addf %3, %6 : vector<32x128xf32>
    %c0_6 = arith.constant 0 : index
    %c0_7 = arith.constant 0 : index
    %8 = vector.load %arg7[%c0_6, %c0_7] : memref<32x128xf32, #tpu.memory_space<vmem>>, vector<32x128xf32>
    tpu.vector_store %arg7[%c0_6, %c0_7], %7 {strides = array<i32>} : memref<32x128xf32, #tpu.memory_space<vmem>>, vector<32x128xf32>,
    %c0_i32_8 = arith.constant 0 : i32
    %9 = arith.cmpi eq, %arg2, %c0_i32_8 : i32
    %10 = arith.extui %9 : i1 to i32
    %c0_i32_9 = arith.constant 0 : i32
    %11 = arith.cmpi ne, %10, %c0_i32_9 : i32
    scf.if %11 {
      %c0_10 = arith.constant 0 : index
      %c0_11 = arith.constant 0 : index
      %12 = vector.load %arg7[%c0_10, %c0_11] : memref<32x128xf32, #tpu.memory_space<vmem>>, vector<32x128xf32>
      %c0_12 = arith.constant 0 : index
      %c0_13 = arith.constant 0 : index
      %13 = vector.load %arg5[%c0_12, %c0_13] : memref<1x128xf32, #tpu.memory_space<vmem>>, vector<1x128xf32>
      %14 = vector.broadcast %13 : vector<1x128xf32> to vector<32x128xf32>
      %15 = arith.addf %12, %14 : vector<32x128xf32>
      %cst_14 = arith.constant 0.000000e+00 : f32
      %16 = vector.broadcast %cst_14 : f32 to vector<32x128xf32>
      %17 = arith.maximumf %15, %16 : vector<32x128xf32>
      %18 = arith.truncf %17 : vector<32x128xf32> to vector<32x128xbf16>
      %c0_15 = arith.constant 0 : index
      %c0_16 = arith.constant 0 : index
      %19 = vector.load %arg6[%c0_15, %c0_16] : memref<32x128xbf16, #tpu.memory_space<vmem>>, vector<32x128xbf16>
      tpu.vector_store %arg6[%c0_15, %c0_16], %18 {strides = array<i32>} : memref<32x128xbf16, #tpu.memory_space<vmem>>, vector<32x128xbf16>,
    } else {
    }
    return
  }
  func.func @transform_0(%arg0: i32, %arg1: i32, %arg2: i32) -> (i32, i32) {
    %c0_i32 = arith.constant 0 : i32
    return %arg0, %arg2 : i32, i32
  }
  func.func @transform_1(%arg0: i32, %arg1: i32, %arg2: i32) -> (i32, i32) {
    %c0_i32 = arith.constant 0 : i32
    return %arg2, %arg1 : i32, i32
  }
  func.func @transform_2(%arg0: i32, %arg1: i32, %arg2: i32) -> (i32, i32) {
    %c0_i32 = arith.constant 0 : i32
    %c0_i32_0 = arith.constant 0 : i32
    return %c0_i32, %arg1 : i32, i32
  }
  func.func @transform_3(%arg0: i32, %arg1: i32, %arg2: i32) -> (i32, i32) {
    %c0_i32 = arith.constant 0 : i32
    return %arg0, %arg1 : i32, i32
  }
}

module attributes {stable_mosaic.version = 11 : i64} {
  func.func @_matmul_kernel(%arg0: i32, %arg1: i32, %arg2: i32, %arg3: memref<8x32xbf16, #tpu.memory_space<vmem>>, %arg4: memref<32x256xbf16, #tpu.memory_space<vmem>>, %arg5: memref<1x256xf32, #tpu.memory_space<vmem>>, %arg6: memref<8x256xf32, #tpu.memory_space<vmem>>, %arg7: memref<8x256xf32, #tpu.memory_space<vmem>>) attributes {dimension_semantics = [#tpu.dimension_semantics<parallel>, #tpu.dimension_semantics<parallel>, #tpu.dimension_semantics<arbitrary>], iteration_bounds = array<i64: 1, 3, 1>, scalar_prefetch = 0 : i64, scratch_operands = 1 : i64, tpu.core_type = #tpu.core_type<tc>, window_params = [{transform_indices = @transform_0, window_bounds = array<i64: 8, 32>}, {transform_indices = @transform_1, window_bounds = array<i64: 32, 256>}, {transform_indices = @transform_2, window_bounds = array<i64: 1, 256>}, {transform_indices = @transform_3, window_bounds = array<i64: 8, 256>}]} {
    %c0_i32 = arith.constant 0 : i32
    %0 = arith.cmpi eq, %arg2, %c0_i32 : i32
    %1 = arith.extui %0 : i1 to i32
    %c0_i32_0 = arith.constant 0 : i32
    %2 = arith.cmpi ne, %1, %c0_i32_0 : i32
    scf.if %2 {
      %cst_10 = arith.constant 0.000000e+00 : f32
      %12 = vector.broadcast %cst_10 : f32 to vector<8x256xf32>
      %c0_11 = arith.constant 0 : index
      %c0_12 = arith.constant 0 : index
      %13 = vector.load %arg7[%c0_11, %c0_12] : memref<8x256xf32, #tpu.memory_space<vmem>>, vector<8x256xf32>
      tpu.vector_store %arg7[%c0_11, %c0_12], %12 {strides = array<i32>} : memref<8x256xf32, #tpu.memory_space<vmem>>, vector<8x256xf32>,
    } else {
    }
    %c0 = arith.constant 0 : index
    %c0_1 = arith.constant 0 : index
    %3 = vector.load %arg7[%c0, %c0_1] : memref<8x256xf32, #tpu.memory_space<vmem>>, vector<8x256xf32>
    %c0_2 = arith.constant 0 : index
    %c0_3 = arith.constant 0 : index
    %4 = vector.load %arg3[%c0_2, %c0_3] : memref<8x32xbf16, #tpu.memory_space<vmem>>, vector<8x32xbf16>
    %c0_4 = arith.constant 0 : index
    %c0_5 = arith.constant 0 : index
    %5 = vector.load %arg4[%c0_4, %c0_5] : memref<32x256xbf16, #tpu.memory_space<vmem>>, vector<32x256xbf16>
    %cst = arith.constant dense<0.000000e+00> : vector<8x256xf32>
    %6 = tpu.matmul %4, %5, %cst {dimension_numbers = #tpu.dot_dimension_numbers<[1], [0], [0], [1], [0, 0, 1, 1], [], []>} : vector<8x32xbf16>, vector<32x256xbf16>, vector<8x256xf32> -> vector<8x256xf32>
    %7 = arith.addf %3, %6 : vector<8x256xf32>
    %c0_6 = arith.constant 0 : index
    %c0_7 = arith.constant 0 : index
    %8 = vector.load %arg7[%c0_6, %c0_7] : memref<8x256xf32, #tpu.memory_space<vmem>>, vector<8x256xf32>
    tpu.vector_store %arg7[%c0_6, %c0_7], %7 {strides = array<i32>} : memref<8x256xf32, #tpu.memory_space<vmem>>, vector<8x256xf32>,
    %c0_i32_8 = arith.constant 0 : i32
    %9 = arith.cmpi eq, %arg2, %c0_i32_8 : i32
    %10 = arith.extui %9 : i1 to i32
    %c0_i32_9 = arith.constant 0 : i32
    %11 = arith.cmpi ne, %10, %c0_i32_9 : i32
    scf.if %11 {
      %c0_10 = arith.constant 0 : index
      %c0_11 = arith.constant 0 : index
      %12 = vector.load %arg7[%c0_10, %c0_11] : memref<8x256xf32, #tpu.memory_space<vmem>>, vector<8x256xf32>
      %c0_12 = arith.constant 0 : index
      %c0_13 = arith.constant 0 : index
      %13 = vector.load %arg5[%c0_12, %c0_13] : memref<1x256xf32, #tpu.memory_space<vmem>>, vector<1x256xf32>
      %14 = vector.broadcast %13 : vector<1x256xf32> to vector<8x256xf32>
      %15 = arith.addf %12, %14 : vector<8x256xf32>
      %c0_14 = arith.constant 0 : index
      %c0_15 = arith.constant 0 : index
      %16 = vector.load %arg6[%c0_14, %c0_15] : memref<8x256xf32, #tpu.memory_space<vmem>>, vector<8x256xf32>
      tpu.vector_store %arg6[%c0_14, %c0_15], %15 {strides = array<i32>} : memref<8x256xf32, #tpu.memory_space<vmem>>, vector<8x256xf32>,
    } else {
    }
    return
  }
  func.func @transform_0(%arg0: i32, %arg1: i32, %arg2: i32) -> (i32, i32) {
    %c0_i32 = arith.constant 0 : i32
    return %arg0, %arg2 : i32, i32
  }
  func.func @transform_1(%arg0: i32, %arg1: i32, %arg2: i32) -> (i32, i32) {
    %c0_i32 = arith.constant 0 : i32
    return %arg2, %arg1 : i32, i32
  }
  func.func @transform_2(%arg0: i32, %arg1: i32, %arg2: i32) -> (i32, i32) {
    %c0_i32 = arith.constant 0 : i32
    %c0_i32_0 = arith.constant 0 : i32
    return %c0_i32, %arg1 : i32, i32
  }
  func.func @transform_3(%arg0: i32, %arg1: i32, %arg2: i32) -> (i32, i32) {
    %c0_i32 = arith.constant 0 : i32
    return %arg0, %arg1 : i32, i32
  }
}

module attributes {stable_mosaic.version = 11 : i64} {
  func.func @_fc_softmax_kernel(%arg0: i32, %arg1: memref<8x256xbf16, #tpu.memory_space<vmem>>, %arg2: memref<256x128xbf16, #tpu.memory_space<vmem>>, %arg3: memref<1x128xf32, #tpu.memory_space<vmem>>, %arg4: memref<8x128xf32, #tpu.memory_space<vmem>>) attributes {dimension_semantics = [#tpu.dimension_semantics<parallel>], iteration_bounds = array<i64: 1>, scalar_prefetch = 0 : i64, scratch_operands = 0 : i64, tpu.core_type = #tpu.core_type<tc>, window_params = [{transform_indices = @transform_0, window_bounds = array<i64: 8, 256>}, {pipeline_mode = #tpu.pipeline_mode<synchronous>, transform_indices = @transform_1, window_bounds = array<i64: 256, 128>}, {pipeline_mode = #tpu.pipeline_mode<synchronous>, transform_indices = @transform_2, window_bounds = array<i64: 1, 128>}, {transform_indices = @transform_3, window_bounds = array<i64: 8, 128>}]} {
    %c0 = arith.constant 0 : index
    %c0_0 = arith.constant 0 : index
    %0 = vector.load %arg1[%c0, %c0_0] : memref<8x256xbf16, #tpu.memory_space<vmem>>, vector<8x256xbf16>
    %c0_1 = arith.constant 0 : index
    %c0_2 = arith.constant 0 : index
    %1 = vector.load %arg2[%c0_1, %c0_2] : memref<256x128xbf16, #tpu.memory_space<vmem>>, vector<256x128xbf16>
    %cst = arith.constant dense<0.000000e+00> : vector<8x128xf32>
    %2 = tpu.matmul %0, %1, %cst {dimension_numbers = #tpu.dot_dimension_numbers<[1], [0], [0], [1], [0, 0, 1, 1], [], []>} : vector<8x256xbf16>, vector<256x128xbf16>, vector<8x128xf32> -> vector<8x128xf32>
    %c0_3 = arith.constant 0 : index
    %c0_4 = arith.constant 0 : index
    %3 = vector.load %arg3[%c0_3, %c0_4] : memref<1x128xf32, #tpu.memory_space<vmem>>, vector<1x128xf32>
    %4 = vector.broadcast %3 : vector<1x128xf32> to vector<8x128xf32>
    %5 = arith.addf %2, %4 : vector<8x128xf32>
    %6 = tpu.iota {dimensions = array<i32: 1>} : vector<8x128xi32>
    %c40_i32 = arith.constant 40 : i32
    %7 = vector.broadcast %c40_i32 : i32 to vector<8x128xi32>
    %8 = arith.cmpi slt, %6, %7 : vector<8x128xi32>
    %cst_5 = arith.constant -1.000000e+30 : f32
    %9 = vector.broadcast %cst_5 : f32 to vector<8x128xf32>
    %10 = arith.select %8, %5, %9 : vector<8x128xi1>, vector<8x128xf32>
    %cst_6 = arith.constant dense<0xFF800000> : vector<8xf32>
    %11 = vector.multi_reduction <maximumf>, %10, %cst_6 [1] : vector<8x128xf32> to vector<8xf32>
    %12 = vector.shape_cast %11 : vector<8xf32> to vector<8x1xf32>
    %13 = vector.broadcast %12 : vector<8x1xf32> to vector<8x128xf32>
    %14 = arith.subf %10, %13 : vector<8x128xf32>
    %15 = math.exp %14 : vector<8x128xf32>
    %cst_7 = arith.constant dense<0.000000e+00> : vector<8xf32>
    %16 = vector.multi_reduction <add>, %15, %cst_7 [1] : vector<8x128xf32> to vector<8xf32>
    %17 = vector.shape_cast %16 : vector<8xf32> to vector<8x1xf32>
    %18 = tpu.reciprocal %17 {approx = true} : vector<8x1xf32> -> vector<8x1xf32>
    %19 = arith.mulf %17, %18 : vector<8x1xf32>
    %cst_8 = arith.constant 2.000000e+00 : f32
    %20 = vector.broadcast %cst_8 : f32 to vector<8x1xf32>
    %21 = arith.subf %20, %19 : vector<8x1xf32>
    %22 = arith.mulf %18, %21 : vector<8x1xf32>
    %23 = vector.broadcast %22 : vector<8x1xf32> to vector<8x128xf32>
    %24 = arith.mulf %15, %23 : vector<8x128xf32>
    %c0_9 = arith.constant 0 : index
    %c0_10 = arith.constant 0 : index
    %25 = vector.load %arg4[%c0_9, %c0_10] : memref<8x128xf32, #tpu.memory_space<vmem>>, vector<8x128xf32>
    tpu.vector_store %arg4[%c0_9, %c0_10], %24 {strides = array<i32>} : memref<8x128xf32, #tpu.memory_space<vmem>>, vector<8x128xf32>,
    return
  }
  func.func @transform_0(%arg0: i32) -> (i32, i32) {
    %c0_i32 = arith.constant 0 : i32
    %c0_i32_0 = arith.constant 0 : i32
    return %arg0, %c0_i32 : i32, i32
  }
  func.func @transform_1(%arg0: i32) -> (i32, i32) {
    %c0_i32 = arith.constant 0 : i32
    %c0_i32_0 = arith.constant 0 : i32
    %c0_i32_1 = arith.constant 0 : i32
    return %c0_i32, %c0_i32_0 : i32, i32
  }
  func.func @transform_2(%arg0: i32) -> (i32, i32) {
    %c0_i32 = arith.constant 0 : i32
    %c0_i32_0 = arith.constant 0 : i32
    %c0_i32_1 = arith.constant 0 : i32
    return %c0_i32, %c0_i32_0 : i32, i32
  }
  func.func @transform_3(%arg0: i32) -> (i32, i32) {
    %c0_i32 = arith.constant 0 : i32
    %c0_i32_0 = arith.constant 0 : i32
    return %arg0, %c0_i32 : i32, i32
  }
}

module attributes {stable_mosaic.version = 11 : i64} {
  func.func @_bigru_kernel(%arg0: i32, %arg1: i32, %arg2: memref<1x2x384xf32, #tpu.memory_space<vmem>>, %arg3: memref<1x128x384xbf16, #tpu.memory_space<vmem>>, %arg4: memref<1x1x128xf32, #tpu.memory_space<vmem>>, %arg5: memref<1x2x128xf32, #tpu.memory_space<vmem>>, %arg6: memref<2x128xf32, #tpu.memory_space<vmem>>) attributes {dimension_semantics = [#tpu.dimension_semantics<parallel>, #tpu.dimension_semantics<arbitrary>], iteration_bounds = array<i64: 2, 4>, scalar_prefetch = 0 : i64, scratch_operands = 1 : i64, tpu.core_type = #tpu.core_type<tc>, window_params = [{transform_indices = @transform_0, window_bounds = array<i64: 1, 2, 384>}, {transform_indices = @transform_1, window_bounds = array<i64: 1, 128, 384>}, {transform_indices = @transform_2, window_bounds = array<i64: 1, 1, 128>}, {transform_indices = @transform_3, window_bounds = array<i64: 1, 2, 128>}]} {
    %c0_i32 = arith.constant 0 : i32
    %0 = arith.cmpi eq, %arg1, %c0_i32 : i32
    %1 = arith.extui %0 : i1 to i32
    %c0_i32_0 = arith.constant 0 : i32
    %2 = arith.cmpi ne, %1, %c0_i32_0 : i32
    scf.if %2 {
      %cst_19 = arith.constant 0.000000e+00 : f32
      %44 = vector.broadcast %cst_19 : f32 to vector<2x128xf32>
      %c0_20 = arith.constant 0 : index
      %c0_21 = arith.constant 0 : index
      %45 = vector.load %arg6[%c0_20, %c0_21] : memref<2x128xf32, #tpu.memory_space<vmem>>, vector<2x128xf32>
      tpu.vector_store %arg6[%c0_20, %c0_21], %44 {strides = array<i32>} : memref<2x128xf32, #tpu.memory_space<vmem>>, vector<2x128xf32>,
    } else {
    }
    %c0 = arith.constant 0 : index
    %c0_1 = arith.constant 0 : index
    %3 = vector.load %arg6[%c0, %c0_1] : memref<2x128xf32, #tpu.memory_space<vmem>>, vector<2x128xf32>
    %c0_2 = arith.constant 0 : index
    %c0_3 = arith.constant 0 : index
    %c0_4 = arith.constant 0 : index
    %4 = vector.load %arg2[%c0_2, %c0_3, %c0_4] : memref<1x2x384xf32, #tpu.memory_space<vmem>>, vector<1x2x384xf32>
    %5 = vector.shape_cast %4 : vector<1x2x384xf32> to vector<2x384xf32>
    %6 = arith.truncf %3 : vector<2x128xf32> to vector<2x128xbf16>
    %c0_5 = arith.constant 0 : index
    %c0_6 = arith.constant 0 : index
    %c0_7 = arith.constant 0 : index
    %7 = vector.load %arg3[%c0_5, %c0_6, %c0_7] : memref<1x128x384xbf16, #tpu.memory_space<vmem>>, vector<1x128x384xbf16>
    %8 = vector.shape_cast %7 : vector<1x128x384xbf16> to vector<128x384xbf16>
    %cst = arith.constant dense<0.000000e+00> : vector<2x384xf32>
    %9 = tpu.matmul %6, %8, %cst {dimension_numbers = #tpu.dot_dimension_numbers<[1], [0], [0], [1], [0, 0, 1, 1], [], []>} : vector<2x128xbf16>, vector<128x384xbf16>, vector<2x384xf32> -> vector<2x384xf32>
    %10 = vector.extract_strided_slice %5 {offsets = [0, 0], sizes = [2, 128], strides = [1, 1]} : vector<2x384xf32> to vector<2x128xf32>
    %11 = vector.extract_strided_slice %9 {offsets = [0, 0], sizes = [2, 128], strides = [1, 1]} : vector<2x384xf32> to vector<2x128xf32>
    %12 = arith.addf %10, %11 : vector<2x128xf32>
    %13 = arith.negf %12 : vector<2x128xf32>
    %14 = math.exp %13 : vector<2x128xf32>
    %cst_8 = arith.constant 1.000000e+00 : f32
    %15 = vector.broadcast %cst_8 : f32 to vector<2x128xf32>
    %16 = arith.addf %15, %14 : vector<2x128xf32>
    %17 = arith.divf %15, %16 : vector<2x128xf32>
    %18 = vector.extract_strided_slice %5 {offsets = [0, 128], sizes = [2, 128], strides = [1, 1]} : vector<2x384xf32> to vector<2x128xf32>
    %19 = vector.extract_strided_slice %9 {offsets = [0, 128], sizes = [2, 128], strides = [1, 1]} : vector<2x384xf32> to vector<2x128xf32>
    %20 = arith.addf %18, %19 : vector<2x128xf32>
    %21 = arith.negf %20 : vector<2x128xf32>
    %22 = math.exp %21 : vector<2x128xf32>
    %cst_9 = arith.constant 1.000000e+00 : f32
    %23 = vector.broadcast %cst_9 : f32 to vector<2x128xf32>
    %24 = arith.addf %23, %22 : vector<2x128xf32>
    %25 = arith.divf %23, %24 : vector<2x128xf32>
    %26 = vector.extract_strided_slice %5 {offsets = [0, 256], sizes = [2, 128], strides = [1, 1]} : vector<2x384xf32> to vector<2x128xf32>
    %27 = vector.extract_strided_slice %9 {offsets = [0, 256], sizes = [2, 128], strides = [1, 1]} : vector<2x384xf32> to vector<2x128xf32>
    %c0_10 = arith.constant 0 : index
    %c0_11 = arith.constant 0 : index
    %c0_12 = arith.constant 0 : index
    %28 = vector.load %arg4[%c0_10, %c0_11, %c0_12] : memref<1x1x128xf32, #tpu.memory_space<vmem>>, vector<1x1x128xf32>
    %29 = vector.shape_cast %28 : vector<1x1x128xf32> to vector<1x128xf32>
    %30 = vector.broadcast %29 : vector<1x128xf32> to vector<2x128xf32>
    %31 = arith.addf %27, %30 : vector<2x128xf32>
    %32 = arith.mulf %17, %31 : vector<2x128xf32>
    %33 = arith.addf %26, %32 : vector<2x128xf32>
    %34 = math.tanh %33 : vector<2x128xf32>
    %cst_13 = arith.constant 1.000000e+00 : f32
    %35 = vector.broadcast %cst_13 : f32 to vector<2x128xf32>
    %36 = arith.subf %35, %25 : vector<2x128xf32>
    %37 = arith.mulf %36, %34 : vector<2x128xf32>
    %38 = arith.mulf %25, %3 : vector<2x128xf32>
    %39 = arith.addf %37, %38 : vector<2x128xf32>
    %c0_14 = arith.constant 0 : index
    %c0_15 = arith.constant 0 : index
    %40 = vector.load %arg6[%c0_14, %c0_15] : memref<2x128xf32, #tpu.memory_space<vmem>>, vector<2x128xf32>
    tpu.vector_store %arg6[%c0_14, %c0_15], %39 {strides = array<i32>} : memref<2x128xf32, #tpu.memory_space<vmem>>, vector<2x128xf32>,
    %c0_16 = arith.constant 0 : index
    %c0_17 = arith.constant 0 : index
    %c0_18 = arith.constant 0 : index
    %41 = vector.load %arg5[%c0_16, %c0_17, %c0_18] : memref<1x2x128xf32, #tpu.memory_space<vmem>>, vector<1x2x128xf32>
    %42 = vector.shape_cast %41 : vector<1x2x128xf32> to vector<2x128xf32>
    %43 = vector.shape_cast %39 : vector<2x128xf32> to vector<1x2x128xf32>
    tpu.vector_store %arg5[%c0_16, %c0_17, %c0_18], %43 {strides = array<i32>} : memref<1x2x128xf32, #tpu.memory_space<vmem>>, vector<1x2x128xf32>,
    return
  }
  func.func @transform_0(%arg0: i32, %arg1: i32) -> (i32, i32, i32) {
    %c1_i32 = arith.constant 1 : i32
    %0 = arith.subi %c1_i32, %arg0 : i32
    %1 = arith.muli %0, %arg1 : i32
    %c3_i32 = arith.constant 3 : i32
    %2 = arith.subi %c3_i32, %arg1 : i32
    %3 = arith.muli %arg0, %2 : i32
    %4 = arith.addi %1, %3 : i32
    %c0_i32 = arith.constant 0 : i32
    %c0_i32_0 = arith.constant 0 : i32
    return %4, %c0_i32, %arg0 : i32, i32, i32
  }
  func.func @transform_1(%arg0: i32, %arg1: i32) -> (i32, i32, i32) {
    %c0_i32 = arith.constant 0 : i32
    %c0_i32_0 = arith.constant 0 : i32
    %c0_i32_1 = arith.constant 0 : i32
    return %arg0, %c0_i32, %c0_i32_0 : i32, i32, i32
  }
  func.func @transform_2(%arg0: i32, %arg1: i32) -> (i32, i32, i32) {
    %c0_i32 = arith.constant 0 : i32
    %c0_i32_0 = arith.constant 0 : i32
    %c0_i32_1 = arith.constant 0 : i32
    return %arg0, %c0_i32, %c0_i32_0 : i32, i32, i32
  }
  func.func @transform_3(%arg0: i32, %arg1: i32) -> (i32, i32, i32) {
    %c1_i32 = arith.constant 1 : i32
    %0 = arith.subi %c1_i32, %arg0 : i32
    %1 = arith.muli %0, %arg1 : i32
    %c3_i32 = arith.constant 3 : i32
    %2 = arith.subi %c3_i32, %arg1 : i32
    %3 = arith.muli %arg0, %2 : i32
    %4 = arith.addi %1, %3 : i32
    %c0_i32 = arith.constant 0 : i32
    %c0_i32_0 = arith.constant 0 : i32
    return %4, %c0_i32, %arg0 : i32, i32, i32
  }
}

</mosaic_0001>

<bundles_post_ra>
// kernel: deepspeech2_export_forward.6
= control target key start
LH: loop header
LB: loop body
LE: loop exit
PB: predicated region body
PF: predicated region fallthrough
CT: control target
= control target key end

     0   :  { %vm56_vm0 = vcmask 125952   ;;  %s125_s0 = inlined_call_operand.vmem [shape: f32[32,16], index: 0, kind: input, shape index: {}]   ;;  %s126_s1 = inlined_call_operand.vmem [shape: f32[1,16], index: 1, kind: input, shape index: {}]   ;;  %s127_s2 = inlined_call_operand.vmem [shape: f32[1,16], index: 2, kind: input, shape index: {}]   ;;  %s128_s3 = inlined_call_operand.vmem [shape: bf16[32,16], index: 3, kind: output, shape index: {}]  }
   0x1   :  { %v14_v0 = vld [vmem:[%s125_s0] sm:$0xff]  ;;  %v15_v4 = vld [vmem:[%s125_s0 + $0x8] sm:$0xff]  ;;  %v16_v5 = vld [vmem:[%s125_s0 + $0x10] sm:$0xff] }
   0x2   :  { %v65_v1 = vld [vmem:[%s126_s1] ss:$0 sm:$0xff]  ;;  %v17_v6 = vld [vmem:[%s125_s0 + $0x18] sm:$0xff] }
   0x3   :  { %v66_v2 = vld [vmem:[%s127_s2] ss:$0 sm:$0xff]  ;;  %v25_v3 = vsub.f32 %v14_v0, %v65_v1  ;;  %v26_v7 = vsub.f32 %v15_v4, %v65_v1  ;;  %v27_v8 = vsub.f32 %v16_v5, %v65_v1  ;;  %v28_v9 = vsub.f32 %v17_v6, %v65_v1 }
   0x5   :  { %v36_v10 = vmul.f32 %v66_v2, %v25_v3  ;;  %v37_v11 = vmul.f32 %v66_v2, %v26_v7  ;;  %v38_v12 = vmul.f32 %v66_v2, %v27_v8  ;;  %v39_v13 = vmul.f32 %v66_v2, %v28_v9 }
   0x7   :  { %v71_v14 = vpack.c.bf16 %v36_v10, %v36_v10  ;;  %v72_v15 = vpack.c.bf16 %v37_v11, %v37_v11  ;;  %v73_v16 = vpack.c.bf16 %v38_v12, %v38_v12  ;;  %v74_v17 = vpack.c.bf16 %v39_v13, %v39_v13 }
   0x9   :  { %57 = vst.msk [vmem:[%s128_s3] sm:$0xf] %vm56_vm0, %v71_v14  ;;  %58 = vst.msk [vmem:[%s128_s3 + $0x4] sm:$0xf] %vm56_vm0, %v72_v15 }
   0xa   :  { %59 = vst.msk [vmem:[%s128_s3 + $0x8] sm:$0xf] %vm56_vm0, %v73_v16  ;;  %60 = vst.msk [vmem:[%s128_s3 + $0xc] sm:$0xf] %vm56_vm0, %v74_v17 }

// kernel: deepspeech2_export_forward.7
= control target key start
LH: loop header
LB: loop body
LE: loop exit
PB: predicated region body
PF: predicated region fallthrough
CT: control target
= control target key end

     0   :  { %vm139_vm0 = vcmask 1043456   ;;  %vm140_vm1 = vcmask 1044480   ;;  %vm114_vm2 = vcmask 72704   ;;  %v553_v1 = vmov 65535   ;;  %s636_s1 = inlined_call_operand.vmem [shape: bf16[9,128], index: 1, kind: input, shape index: {}]   ;;  %s637_s0 = inlined_call_operand.vmem [shape: bf16[128,9], index: 0, kind: input, shape index: {}]   ;;  %s638_s2 = inlined_call_operand.vmem [shape: f32[1,128], index: 2, kind: input, shape index: {}]   ;;  %s639_s3 = inlined_call_operand.vmem [shape: bf16[128,128], index: 3, kind: output, shape index: {}]  }
   0x1   :  { %v544_v0 = vld [vmem:[%s636_s1] sm:$0x1f]   ;;  %v141_v2 = vsel %vm139_vm0, 4294967295, %v553_v1  ;;  %v547_v7 = vld [vmem:[%s637_s0 + $0x8] sm:$0xff]   ;;  %v549_v9 = vld [vmem:[%s637_s0 + $0x10] sm:$0xff]  }
   0x2   :  { %v545_v3 = vld [vmem:[%s637_s0] sm:$0xff]   ;;  %v142_v4 = vsel %vm140_vm1, %v141_v2, 0  ;;  %v548_v8 = vld [vmem:[%s637_s0 + $0x28] sm:$0xff]   ;;  %v550_v10 = vld [vmem:[%s637_s0 + $0x30] sm:$0xff]  }
   0x3   :  { %v546_v5 = vld [vmem:[%s637_s0 + $0x20] sm:$0xff]   ;;  %v144_v6 = vand.u32 %v544_v0, %v142_v4  ;;  %525 = vmatprep.mubr.msk.bf16.mxu0 %vm114_vm2, %v545_v3  ;;  %v551_v11 = vld [vmem:[%s637_s0 + $0x18] sm:$0xff]  }
   0x4   :  { %533 = vmatprep.mubr.msk.bf16.mxu1 %vm114_vm2, %v546_v5  ;;  %v552_v12 = vld [vmem:[%s637_s0 + $0x38] sm:$0xff]   ;;  %v434_v13 = vld [vmem:[%s638_s2] ss:$0 sm:$0xff] }
   0x5   :  { %523 = vmatprep.subr.bf16.mxu0 %v144_v6  ;;  %541 = vmatprep.subr.bf16.mxu1 %v144_v6 }
   0x6   :  { %524 = vmatpush3.bf16.msra.mxu0 %v144_v6  ;;  %542 = vmatpush3.bf16.msra.mxu1 %v144_v6 }
   0x9   :  { %526 = vmatmul.mubr.msk.bf16.vlgmr.msra.gmra.mrb[0].mxu0 %vm114_vm2, %v547_v7  ;;  %534 = vmatmul.mubr.msk.bf16.vlgmr.msra.gmra.mrb[0].mxu1 %vm114_vm2, %v548_v8 }
   0xa   :  { %529 = vmatprep.mubr.msk.bf16.mxu0 %vm114_vm2, %v549_v9  ;;  %537 = vmatprep.mubr.msk.bf16.mxu1 %vm114_vm2, %v550_v10 }
  0x11   :  { %530 = vmatmul.mubr.msk.bf16.gmra.mrb[4].mxu0 %vm114_vm2, %v551_v11  ;;  %538 = vmatmul.mubr.msk.bf16.gmra.mrb[4].mxu1 %vm114_vm2, %v552_v12 }
  0xdc   :  { %v527_v14 = vpop.f32.mrb[0].mxu0  ;;  %v535_v15 = vpop.f32.mrb[0].mxu1 }
  0xdd   :  { %v303_v16 = vadd.f32 %v527_v14, %v434_v13  ;;  %v311_v17 = vadd.f32 %v535_v15, %v434_v13  ;;  %v180_v18 = vpop.f32.mrb[1].mxu0  ;;  %v212_v19 = vpop.f32.mrb[1].mxu1 }
  0xde   :  { %v301_v20 = vadd.f32 %v434_v13, %v180_v18  ;;  %v309_v21 = vadd.f32 %v434_v13, %v212_v19  ;;  %v528_v22 = vpop.f32.mrb[2].mxu0  ;;  %v536_v23 = vpop.f32.mrb[2].mxu1 }
  0xdf   :  { %v304_v24 = vadd.f32 %v528_v22, %v434_v13  ;;  %v312_v25 = vadd.f32 %v536_v23, %v434_v13  ;;  %v183_v26 = vpop.f32.mrb[3].mxu0  ;;  %v215_v27 = vpop.f32.mrb[3].mxu1  ;;  %v319_v30 = vmax.f32 %v303_v16, 0.0  ;;  %v327_v31 = vmax.f32 %v311_v17, 0.0 }
  0xe0   :  { %v302_v28 = vadd.f32 %v434_v13, %v183_v26  ;;  %v310_v29 = vadd.f32 %v434_v13, %v215_v27  ;;  %v317_v34 = vmax.f32 %v301_v20, 0.0  ;;  %v325_v35 = vmax.f32 %v309_v21, 0.0 }
  0xe1   :  { %v320_v32 = vmax.f32 %v304_v24, 0.0  ;;  %v328_v33 = vmax.f32 %v312_v25, 0.0 }
  0xe2   :  { %v318_v36 = vmax.f32 %v302_v28, 0.0  ;;  %v326_v37 = vmax.f32 %v310_v29, 0.0 }
  0xe3   :  { %v475_v38 = vpack.c.bf16 %v320_v32, %v319_v30  ;;  %v495_v39 = vpack.c.bf16 %v328_v33, %v327_v31 }
  0xe4   :  { %v470_v40 = vpack.c.bf16 %v318_v36, %v317_v34  ;;  %v490_v41 = vpack.c.bf16 %v326_v37, %v325_v35  ;;  %v531_v42 = vpop.f32.mrb[4].mxu0  ;;  %v539_v43 = vpop.f32.mrb[4].mxu1 }
  0xe5   :  { %507 = vst [vmem:[%s639_s3 + $0x8] sm:$0xff] %v475_v38   ;;  %511 = vst [vmem:[%s639_s3 + $0x28] sm:$0xff] %v495_v39   ;;  %v307_v44 = vadd.f32 %v531_v42, %v434_v13  ;;  %v315_v45 = vadd.f32 %v539_v43, %v434_v13  ;;  %v196_v46 = vpop.f32.mrb[5].mxu0  ;;  %v228_v47 = vpop.f32.mrb[5].mxu1 }
  0xe6   :  { %471 = vst [vmem:[%s639_s3] sm:$0xff] %v470_v40   ;;  %510 = vst [vmem:[%s639_s3 + $0x20] sm:$0xff] %v490_v41   ;;  %v305_v48 = vadd.f32 %v434_v13, %v196_v46  ;;  %v313_v49 = vadd.f32 %v434_v13, %v228_v47  ;;  %v532_v50 = vpop.f32.mrb[6].mxu0  ;;  %v540_v51 = vpop.f32.mrb[6].mxu1 }
  0xe7   :  { %v308_v52 = vadd.f32 %v532_v50, %v434_v13  ;;  %v316_v53 = vadd.f32 %v540_v51, %v434_v13  ;;  %v199_v54 = vpop.f32.mrb[7].mxu0  ;;  %v231_v55 = vpop.f32.mrb[7].mxu1  ;;  %v323_v58 = vmax.f32 %v307_v44, 0.0  ;;  %v331_v59 = vmax.f32 %v315_v45, 0.0 }
  0xe8   :  { %v306_v56 = vadd.f32 %v434_v13, %v199_v54  ;;  %v314_v57 = vadd.f32 %v434_v13, %v231_v55  ;;  %v321_v62 = vmax.f32 %v305_v48, 0.0  ;;  %v329_v63 = vmax.f32 %v313_v49, 0.0 }
  0xe9   :  { %v324_v60 = vmax.f32 %v308_v52, 0.0  ;;  %v332_v61 = vmax.f32 %v316_v53, 0.0 }
  0xea   :  { %v322_v0 = vmax.f32 %v306_v56, 0.0  ;;  %v330_v1 = vmax.f32 %v314_v57, 0.0 }
  0xeb   :  { %v485_v2 = vpack.c.bf16 %v324_v60, %v323_v58  ;;  %v505_v3 = vpack.c.bf16 %v332_v61, %v331_v59 }
  0xec   :  { %v480_v4 = vpack.c.bf16 %v322_v0, %v321_v62  ;;  %v500_v5 = vpack.c.bf16 %v330_v1, %v329_v63 }
  0xed   :  { %509 = vst [vmem:[%s639_s3 + $0x18] sm:$0xff] %v485_v2   ;;  %513 = vst [vmem:[%s639_s3 + $0x38] sm:$0xff] %v505_v3  }
  0xee   :  { %508 = vst [vmem:[%s639_s3 + $0x10] sm:$0xff] %v480_v4   ;;  %512 = vst [vmem:[%s639_s3 + $0x30] sm:$0xff] %v500_v5  }

// kernel: deepspeech2_export_forward.8
= control target key start
LH: loop header
LB: loop body
LE: loop exit
PB: predicated region body
PF: predicated region fallthrough
CT: control target
= control target key end

     0   :  { %vm77_vm0 = vcmask 588800   ;;  %vm84_vm1 = vcmask 1043456   ;;  %s299_s1 = inlined_call_operand.vmem [shape: bf16[72,128], index: 1, kind: input, shape index: {}]   ;;  %s300_s0 = inlined_call_operand.vmem [shape: bf16[32,72], index: 0, kind: input, shape index: {}]   ;;  %s301_s2 = inlined_call_operand.vmem [shape: f32[1,128], index: 2, kind: input, shape index: {}]   ;;  %s302_s3 = inlined_call_operand.vmem [shape: bf16[32,128], index: 3, kind: output, shape index: {}]  }
   0x1   :  { %v242_v0 = vld [vmem:[%s299_s1] sm:$0xff]   ;;  %v243_v1 = vld [vmem:[%s299_s1 + $0x8] sm:$0xff]   ;;  %v244_v2 = vld [vmem:[%s299_s1 + $0x10] sm:$0xff]  }
   0x2   :  { %227 = vmatprep.subr.bf16.mxu0 %v242_v0  ;;  %v247_v3 = vld [vmem:[%s300_s0] sm:$0xff]   ;;  %v245_v4 = vld [vmem:[%s299_s1 + $0x18] sm:$0xff]   ;;  %v248_v7 = vld [vmem:[%s300_s0 + $0x8] sm:$0xff]  }
   0x3   :  { %228 = vmatpush3.bf16.msra.mxu0 %v242_v0  ;;  %237 = vmatprep.mubr.msk.bf16.mxu0 %vm77_vm0, %v247_v3  ;;  %v246_v5 = vld [vmem:[%s299_s1 + $0x20] ss:$0 sps:$4 sm:$0xff]  }
   0x4   :  { %229 = vmatprep.subr.bf16.mxu0 %v243_v1  ;;  %v86_v6 = vsel %vm84_vm1, %v246_v5, 0  ;;  %v200_v8 = vld [vmem:[%s301_s2] ss:$0 sm:$0xff] }
   0x7   :  { %230 = vmatpush3.bf16.msra.mxu0 %v243_v1 }
   0x8   :  { %231 = vmatprep.subr.bf16.mxu0 %v244_v2 }
   0xb   :  { %232 = vmatpush3.bf16.msra.mxu0 %v244_v2 }
   0xc   :  { %233 = vmatprep.subr.bf16.mxu0 %v245_v4 }
   0xf   :  { %234 = vmatpush3.bf16.msra.mxu0 %v245_v4 }
  0x10   :  { %241 = vmatprep.subr.msk.bf16.mxu0 %vm84_vm1, %v246_v5 }
  0x13   :  { %236 = vmatpush3.bf16.msra.mxu0 %v86_v6 }
  0x16   :  { %238 = vmatmul.mubr.msk.bf16.vlgmr.msra.gmra.mrb[0].mxu0 %vm77_vm0, %v248_v7 }
  0xe9   :  { %v239_v9 = vpop.f32.mrb[0].mxu0 }
  0xea   :  { %v161_v10 = vadd.f32 %v239_v9, %v200_v8  ;;  %v122_v11 = vpop.f32.mrb[1].mxu0 }
  0xeb   :  { %v159_v12 = vadd.f32 %v200_v8, %v122_v11  ;;  %v240_v13 = vpop.f32.mrb[2].mxu0 }
  0xec   :  { %v162_v14 = vadd.f32 %v240_v13, %v200_v8  ;;  %v125_v15 = vpop.f32.mrb[3].mxu0  ;;  %v165_v17 = vmax.f32 %v161_v10, 0.0 }
  0xed   :  { %v160_v16 = vadd.f32 %v200_v8, %v125_v15  ;;  %v163_v19 = vmax.f32 %v159_v12, 0.0 }
  0xee   :  { %v166_v18 = vmax.f32 %v162_v14, 0.0 }
  0xef   :  { %v164_v20 = vmax.f32 %v160_v16, 0.0 }
  0xf0   :  { %v217_v21 = vpack.c.bf16 %v166_v18, %v165_v17 }
  0xf1   :  { %v212_v22 = vpack.c.bf16 %v164_v20, %v163_v19 }
  0xf2   :  { %219 = vst [vmem:[%s302_s3 + $0x8] sm:$0xff] %v217_v21  }
  0xf3   :  { %213 = vst [vmem:[%s302_s3] sm:$0xff] %v212_v22  }

// kernel: deepspeech2_export_forward.9
= control target key start
LH: loop header
LB: loop body
LE: loop exit
PB: predicated region body
PF: predicated region fallthrough
CT: control target
= control target key end

     0   :  { %s655_s12 = smov 0   ;;  %s657_s13 = smov 0   ;;  %s726_s0 = inlined_call_operand.vmem [shape: bf16[8,32], index: 0, kind: input, shape index: {}]   ;;  %s727_s1 = inlined_call_operand.vmem [shape: bf16[32,768], index: 1, kind: input, shape index: {}]   ;;  %s728_s2 = inlined_call_operand.vmem [shape: f32[1,768], index: 2, kind: input, shape index: {}]   ;;  %s729_s3 = inlined_call_operand.vmem [shape: f32[8,768], index: 3, kind: output, shape index: {}]  }
   0x1   :  { %s659_s14 = smov 0   ;;  %s661_s15 = smov 0  }
   0x2   :  { %s663_s16 = smov 0  }
   0x3 LB: > { %s28_s17 = sadd.s32 1, %s628_s15  ;;  %p76_p1 = scmp.ne.s32.totalorder %s620_s13, %s616_s12  ;;  %s632_s16 = sphi %s663_s16, %s13_s16   ;;  %s628_s15 = sphi %s661_s15, %s733_s15   ;;  %s624_s14 = sphi %s659_s14, %s732_s14   ;;  %s620_s13 = sphi %s657_s13, %s731_s13   ;;  %s616_s12 = sphi %s655_s12, %s730_s12  }
   0x4   : > { %p30_p0 = scmp.ge.s32.totalorder %s28_s17, 3  ;;  %p77_p2 = scmp.eq.s32.totalorder %s632_s16, 0 }
   0x5   : > { %s69_s19 = sadd.s32 1, %s620_s13  ;;  %p530_p5 = scmp.ge.s32.totalorder %s632_s16, 3 }
   0x6   : > { %s735_s17 = smov (%p30_p0, %s28_s17), 0  ;;  %p78_p3 = por %p77_p2, %p76_p1 }
   0x7   : > { %s65_s18 = ssub.s32 %s628_s15, %s735_s17  ;;  %166 = sbr.rel (%p530_p5) target bundleno = 21 (0x15), region = 20 }
   0x8   : > { %p67_p4 = scmp.eq.s32.totalorder %s65_s18, 0 }
   0xa   : > { %s690_s20 = scalar_select %p67_p4, %s620_s13, %s69_s19  }
   0xe   : > { %169 = sbr.rel (!%p78_p3) target bundleno = 21 (0x15), region = 24  ;;  %s171_s21 = sand.u32 (%p78_p3), 1, %s620_s13  }
   0xf   : > { %s546_s22 = sshll.u32 (%p78_p3), %s628_s15, 3  ;;  %s531_s23 = sshll.u32 (%p78_p3), %s171_s21, 5 }
  0x10   : > { %s179_s26 = scalar_lea.vmem (%p78_p3), %s727_s1, %s546_s22  ;;  %s173_s27 = scalar_lea.vmem (%p78_p3), [#allocation3], %s531_s23 }
  0x11   : > { %v213_v0 = vld [vmem:[%s179_s26] sm:$0xff] (%p78_p3)  ;;  %v215_v1 = vld [vmem:[%s179_s26 + $0x18] sm:$0xff] (%p78_p3)  ;;  %v217_v2 = vld [vmem:[%s179_s26 + $0x30] sm:$0xff] (%p78_p3) }
  0x12   : > { %214 = vst [vmem:[%s173_s27] sm:$0xff] (%p78_p3), %v213_v0  ;;  %216 = vst [vmem:[%s173_s27 + $0x8] sm:$0xff] (%p78_p3), %v215_v1  ;;  %v219_v3 = vld [vmem:[%s179_s26 + $0x48] sm:$0xff] (%p78_p3) }
  0x13   : > { %218 = vst [vmem:[%s173_s27 + $0x10] sm:$0xff] (%p78_p3), %v217_v2  ;;  %220 = vst [vmem:[%s173_s27 + $0x18] sm:$0xff] (%p78_p3), %v219_v3 }
  0x15 PF: > { %p534_p6 = scmp.ge.s32.totalorder %s632_s16, 1  ;;  %p233_p7 = scmp.lt.s32.totalorder %s632_s16, 4 }
  0x17   : > { %p234_p8 = pnand %p534_p6, %p233_p7 }
  0x18   : > { %s240_s28 = sand.u32 (!%p234_p8), 1, %s616_s12   ;;  %v634_v4 = vmov (!%p234_p8), 0   ;;  %v311_v9 = vld [vmem:[%s726_s0] sm:$0xf] (!%p234_p8)  ;;  %vm336_vm0 = vcmask (!%p234_p8), 261120   ;;  %s536_s6 = sshll.u32 (!%p234_p8), %s624_s14, 1  ;;  %v392_v10 = vlaneseq (!%p234_p8) }
  0x19   : > { %237 = sbr.rel (%p234_p8) target bundleno = 252 (0xfc), region = 66  ;;  %s535_s29 = sshll.u32 (!%p234_p8), %s240_s28, 5  ;;  %372 = vmatprep.mubr.bf16.mxu0 (!%p234_p8), %v634_v4 }
  0x1a   : > { %s242_s30 = scalar_lea.vmem (!%p234_p8), [#allocation3], %s535_s29  ;;  %p288_p9 = scmp.lt.s32.totalorder (!%p234_p8), %s536_s6, 5  ;;  %v393_v11 = vshrl.u32 (!%p234_p8), %v392_v10, 7 }
  0x1b   : > { %v588_v5 = vld [vmem:[%s242_s30 + $0x4] ss:$8 sps:$4 sm:$0xff] (!%p234_p8)   ;;  %v590_v6 = vld [vmem:[%s242_s30] ss:$8 sps:$4 sm:$0xff] (!%p234_p8)   ;;  %v591_v7 = vld [vmem:[%s242_s30 + $0x14] ss:$8 sps:$4 sm:$0xff] (!%p234_p8)  }
  0x1c   : > { %340 = vmatprep.subr.bf16.mxu0 (!%p234_p8), %v588_v5  ;;  %v593_v8 = vld [vmem:[%s242_s30 + $0x10] ss:$8 sps:$4 sm:$0xff] (!%p234_p8)   ;;  %v394_v12 = vsub.s32 (!%p234_p8), 0, %v393_v11  ;;  %v398_v14 = vsub.s32 (!%p234_p8), 1, %v393_v11 }
  0x1d   : > { %341 = vmatpush1.bf16.msra.mxu0 (!%p234_p8), %v590_v6 }
  0x1e   : > { %342 = vmatprep.subr.bf16.mxu0 (!%p234_p8), %v591_v7 }
  0x20   : > { %s737_s6 = smov (!%p288_p9, %s536_s6), 5 }
  0x21   : > { %343 = vmatpush1.bf16.msra.mxu0 %v593_v8  ;;  %s290_s9 = scalar_lea.vmem %s728_s2, %s737_s6  ;;  %s538_s10 = sshll.u32 %s737_s6, 3 }
  0x22   : > { %v390_v13 = vld [vmem:[%s290_s9] sm:$0x3]  ;;  %s300_s18 = scalar_lea.vmem %s729_s3, %s538_s10 }
  0x23   : > { %v395_v15 = vrot.slane %v390_v13, %v394_v12  ;;  %v399_v16 = vrot.slane %v390_v13, %v398_v14 }
  0x24   : > { %543 = vmatmul.mubr.msk.bf16.vlgmr.msra.gmra.mrb[0].mxu0 %vm336_vm0, %v311_v9 }
  0xf7   : > { %v374_v17 = vpop.f32.mrb[0].mxu0 }
  0xf8   : > { %v402_v18 = vadd.f32 %v395_v15, %v374_v17  ;;  %v376_v19 = vpop.f32.mrb[1].mxu0 }
  0xf9   : > { %v403_v20 = vadd.f32 %v399_v16, %v376_v19  ;;  %v378_v21 = vpop.f32.mrb[2].mxu0 }
  0xfa   : > { %404 = vst [vmem:[%s300_s18] sm:$0xff] %v402_v18  ;;  %v379_v22 = vpop.f32.mrb[3].mxu0 }
  0xfb   : > { %405 = vst [vmem:[%s300_s18 + $0x8] sm:$0xff] %v403_v20 }
  0xfc PF: > { %s13_s16 = sadd.s32 1, %s632_s16   ;;  %s730_s12 = smov %s620_s13 }
  0xfd   : > { %p10_p10 = scmp.ge.s32.totalorder %s13_s16, 5   ;;  %s731_s13 = smov %s690_s20 }
  0xfe   : > { %s732_s14 = smov %s628_s15  ;;  %s733_s15 = smov %s735_s17 }
  0xff   :  { %12 = sbr.rel (!%p10_p10) target bundleno = 3 (0x3), region = 119 }

// kernel: deepspeech2_export_forward.11
= control target key start
LH: loop header
LB: loop body
LE: loop exit
PB: predicated region body
PF: predicated region fallthrough
CT: control target
= control target key end

     0   :  { %v198_v19 = vlaneseq  ;;  %s359_s1 = inlined_call_operand.vmem [shape: bf16[256,128], index: 1, kind: input, shape index: {}]   ;;  %s360_s0 = inlined_call_operand.vmem [shape: bf16[8,256], index: 0, kind: input, shape index: {}]   ;;  %s361_s2 = inlined_call_operand.vmem [shape: f32[1,128], index: 2, kind: input, shape index: {}]   ;;  %s362_s3 = inlined_call_operand.vmem [shape: f32[8,128], index: 3, kind: output, shape index: {}]  }
   0x1   :  { %v260_v0 = vld [vmem:[%s359_s1 + $0x40] sm:$0xff]   ;;  %v262_v2 = vld [vmem:[%s359_s1 + $0x48] sm:$0xff]   ;;  %v264_v4 = vld [vmem:[%s359_s1 + $0x50] sm:$0xff]  }
   0x2   :  { %v261_v1 = vld [vmem:[%s359_s1] sm:$0xff]   ;;  %238 = vmatprep.subr.bf16.mxu0 %v260_v0  ;;  %v263_v3 = vld [vmem:[%s359_s1 + $0x8] sm:$0xff]   ;;  %v265_v5 = vld [vmem:[%s359_s1 + $0x10] sm:$0xff]   ;;  %v199_v20 = vand.u32 127, %v198_v19 }
   0x3   :  { %239 = vmatpush3.bf16.msra.mxu0 %v261_v1  ;;  %v266_v6 = vld [vmem:[%s359_s1 + $0x58] sm:$0xff]   ;;  %v268_v8 = vld [vmem:[%s359_s1 + $0x60] sm:$0xff]   ;;  %v270_v10 = vld [vmem:[%s359_s1 + $0x68] sm:$0xff]  }
   0x4   :  { %240 = vmatprep.subr.bf16.mxu0 %v262_v2  ;;  %v267_v7 = vld [vmem:[%s359_s1 + $0x18] sm:$0xff]   ;;  %v269_v9 = vld [vmem:[%s359_s1 + $0x20] sm:$0xff]   ;;  %v271_v13 = vld [vmem:[%s359_s1 + $0x28] sm:$0xff]   ;;  %vm200_vm0 = vcmp.lt.s32.totalorder %v199_v20, 40 }
   0x5   :  { %v15_v11 = vld [vmem:[%s360_s0] sm:$0xff]  ;;  %v272_v14 = vld [vmem:[%s359_s1 + $0x70] sm:$0xff]   ;;  %v274_v16 = vld [vmem:[%s359_s1 + $0x78] sm:$0xff]  }
   0x6   :  { %v221_v12 = vcombine.high %v15_v11, %v15_v11  ;;  %v273_v15 = vld [vmem:[%s359_s1 + $0x30] sm:$0xff]   ;;  %v275_v17 = vld [vmem:[%s359_s1 + $0x38] sm:$0xff]   ;;  %v220_v18 = vcombine.low %v15_v11, %v15_v11  ;;  %v219_v23 = vld [vmem:[%s361_s2] ss:$0 sm:$0xff] }
   0x7   :  { %241 = vmatpush3.bf16.msra.mxu0 %v263_v3 }
   0x8   :  { %242 = vmatprep.subr.bf16.mxu0 %v264_v4  ;;  %190 = vmatprep.mubr.bf16.mxu0 %v221_v12 }
   0xb   :  { %243 = vmatpush3.bf16.msra.mxu0 %v265_v5 }
   0xc   :  { %244 = vmatprep.subr.bf16.mxu0 %v266_v6 }
   0xf   :  { %245 = vmatpush3.bf16.msra.mxu0 %v267_v7 }
  0x10   :  { %246 = vmatprep.subr.bf16.mxu0 %v268_v8 }
  0x13   :  { %247 = vmatpush3.bf16.msra.mxu0 %v269_v9 }
  0x14   :  { %248 = vmatprep.subr.bf16.mxu0 %v270_v10 }
  0x17   :  { %249 = vmatpush3.bf16.msra.mxu0 %v271_v13 }
  0x18   :  { %250 = vmatprep.subr.bf16.mxu0 %v272_v14 }
  0x1b   :  { %251 = vmatpush3.bf16.msra.mxu0 %v273_v15 }
  0x1c   :  { %252 = vmatprep.subr.bf16.mxu0 %v274_v16 }
  0x1f   :  { %253 = vmatpush3.bf16.msra.mxu0 %v275_v17 }
  0x22   :  { %191 = vmatmul.mubr.bf16.vlgmr.msra.gmra.mrb[0].mxu0 %v220_v18 }
  0xf5   :  { %v254_v21 = vpop.f32.mrb[0].mxu0 }
  0xf6   :  { %v255_v22 = vpop.f32.mrb[1].mxu0 }
  0xf7   :  { %v256_v24 = vadd.f32 %v255_v22, %v254_v21  ;;  %v257_v25 = vpop.f32.mrb[2].mxu0 }
  0xf8   :  { %v258_v26 = vpop.f32.mrb[3].mxu0 }
  0xf9   :  { %v193_v27 = vadd.f32 %v256_v24, %v219_v23 }
  0xfb   :  { %v201_v28 = vsel %vm200_vm0, %v193_v27, -1e+30 }
  0xfc   :  { %202 = vmax.xlane.f32.xlu0 %v201_v28 }
 0x189   :  { %v203_v29 = vpop.xlane.xlu0 %202 }
 0x18a   :  { %v204_v30 = vsub.f32 %v201_v28, %v203_v29 }
 0x18c   :  { %v205_v31 = vmul.f32 1.442695, %v204_v30 }
 0x18e   :  { %278 = vpow2.f32 %v205_v31 }
 0x198   :  { %v279_v32 = vpop.eup %278 }
 0x199   :  { %207 = vadd.xlane.f32.xlu0 %v279_v32 }
 0x226   :  { %v208_v33 = vpop.xlane.xlu0 %207 }
 0x227   :  { %280 = vrcp.f32 %v208_v33 }
 0x231   :  { %v281_v34 = vpop.eup %280 }
 0x232   :  { %v210_v35 = vmul.f32 %v281_v34, %v208_v33 }
 0x234   :  { %v211_v36 = vsub.f32 2.0, %v210_v35 }
 0x236   :  { %v212_v37 = vmul.f32 %v281_v34, %v211_v36 }
 0x238   :  { %v213_v38 = vmul.f32 %v279_v32, %v212_v37 }
 0x23a   :  { %214 = vst [vmem:[%s362_s3] sm:$0xff] %v213_v38 }

// kernel: deepspeech2_export_forward.10
= control target key start
LH: loop header
LB: loop body
LE: loop exit
PB: predicated region body
PF: predicated region fallthrough
CT: control target
= control target key end

     0   :  { %s930_s12 = smov 0   ;;  %s932_s13 = smov 0   ;;  %s1034_s0 = inlined_call_operand.vmem [shape: f32[4,2,768], index: 0, kind: input, shape index: {}]   ;;  %s1035_s1 = inlined_call_operand.vmem [shape: bf16[2,128,384], index: 1, kind: input, shape index: {}]   ;;  %s1036_s2 = inlined_call_operand.vmem [shape: f32[2,1,128], index: 2, kind: input, shape index: {}]   ;;  %s1037_s3 = inlined_call_operand.vmem [shape: f32[4,2,256], index: 3, kind: output, shape index: {}]  }
   0x1   :  { %s934_s14 = smov 0   ;;  %s936_s15 = smov 0  }
   0x2   :  { %s938_s16 = smov 0  }
   0x3 LB: > { %s22_s17 = sadd.s32 1, %s896_s14  ;;  %s25_s18 = sadd.s32 1, %s900_s15  ;;  %s904_s16 = sphi %s938_s16, %s13_s16   ;;  %s900_s15 = sphi %s936_s15, %s1041_s15   ;;  %s896_s14 = sphi %s934_s14, %s1040_s14   ;;  %s892_s13 = sphi %s932_s13, %s1039_s13   ;;  %s888_s12 = sphi %s930_s12, %s1038_s12  }
   0x4   : > { %p23_p0 = scmp.ge.s32.totalorder %s22_s17, 4  ;;  %p714_p1 = scmp.ge.s32.totalorder %s904_s16, 1 }
   0x5   : > { %p206_p2 = scmp.lt.s32.totalorder %s904_s16, 9 }
   0x6   : > { %s1043_s17 = smov (%p23_p0, %s22_s17), 0  ;;  %s1045_s18 = smov (!%p23_p0, %s25_s18), %s900_s15 }
   0x7   : > { %p207_p3 = pnand %p714_p1, %p206_p2  ;;  %p27_p4 = scmp.ge.s32.totalorder %s1045_s18, 2 }
   0x8   : > { %s255_s19 = ssub.s32 (!%p207_p3), 1, %s892_s13  ;;  %s257_s20 = ssub.s32 (!%p207_p3), 3, %s888_s12 }
   0x9   : > { %s1047_s18 = smov (%p27_p4, %s1045_s18), 0  ;;  %210 = sbr.rel (%p207_p3) target bundleno = 323 (0x143), region = 32 }
   0xa   : > { %s256_s21 = smul.u32 (!%p207_p3), %s888_s12, %s255_s19  ;;  %p275_p5 = scmp.lt.s32.totalorder (!%p207_p3), %s892_s13, 1 }
   0xb   : > { %s258_s22 = smul.u32 (!%p207_p3), %s892_s13, %s257_s20  ;;  %p719_p8 = scmp.ne.s32.totalorder (!%p207_p3), %s888_s12, 0 }
   0xc   : > { %s260_s23 = smul.u32 (!%p207_p3), 3, %s892_s13 }
   0xd   : > { %s259_s24 = sadd.s32 (!%p207_p3), %s258_s22, %s256_s21 }
   0xe   : > { %p261_p6 = scmp.lt.s32.totalorder (!%p207_p3), %s259_s24, 3  ;;  %p263_p7 = scmp.lt.s32.totalorder (!%p207_p3), %s260_s23, 5 }
  0x10   : > { %s1049_s13 = smov (!%p275_p5, %s892_s13), 1  ;;  %s1051_s24 = smov (!%p261_p6, %s259_s24), 3 }
  0x11   : > { %s1053_s23 = smov (!%p263_p7, %s260_s23), 5  ;;  %s778_s25 = smul.u32 6, %s1051_s24  ;;  %v906_v0 = vmov (!%p719_p8), 0.0  }
  0x12   : > { %s282_s28 = scalar_lea.vmem %s1036_s2, %s1049_s13  ;;  %s779_s29 = smul.u32 192, %s1049_s13  ;;  %306 = vst [vmem:[#allocation2] sm:$0x3] (!%p719_p8), %v906_v0 }
  0x13   : > { %s717_s30 = sshll.u32 %s1051_s24, 1  ;;  %s266_s4 = sadd.s32 %s778_s25, %s1053_s23 }
  0x14   : > { %s293_s5 = sadd.s32 %s717_s30, %s1049_s13  ;;  %s715_s6 = sshll.u32 %s266_s4, 1 }
  0x15   : > { %s975_s9 = scalar_lea.vmem %s1035_s1, %s779_s29  ;;  %s980_s19 = scalar_lea.vmem %s1034_s0, %s715_s6 }
  0x16   : > { %s718_s20 = sshll.u32 %s293_s5, 1  ;;  %305 = sbr.rel (%p719_p8) target bundleno = 29 (0x1d), region = 36 }
  0x17   : > { %s985_s26 = scalar_lea.vmem %s1037_s3, %s718_s20 }
  0x1d PF: > { %v824_v1 = vld [vmem:[%s975_s9 + $0x4] ss:$12 sps:$4 sm:$0xff]   ;;  %v826_v2 = vld [vmem:[%s975_s9] ss:$12 sps:$4 sm:$0xff]   ;;  %v907_v3 = vmov 0.0   ;;  %v908_v4 = vmov 0  }
  0x1e   : > { %758 = vmatprep.subr.bf16.mxu1 %v907_v3  ;;  %502 = vmatprep.mubr.bf16.mxu0 %v908_v4  ;;  %v827_v5 = vld [vmem:[%s975_s9 + $0x1c] ss:$12 sps:$4 sm:$0xff]   ;;  %vm909_vm0 = vmmov 0   ;;  %v829_v6 = vld [vmem:[%s975_s9 + $0x18] ss:$12 sps:$4 sm:$0xff]  }
  0x1f   : > { %470 = vmatprep.subr.bf16.mxu0 %v824_v1  ;;  %774 = vmatprep.mubr.msk.bf16.mxu1 %vm909_vm0, %v907_v3  ;;  %v830_v7 = vld [vmem:[%s975_s9 + $0x34] ss:$12 sps:$4 sm:$0xff]   ;;  %v832_v8 = vld [vmem:[%s975_s9 + $0x30] ss:$12 sps:$4 sm:$0xff]   ;;  %v833_v9 = vld [vmem:[%s975_s9 + $0x4c] ss:$12 sps:$4 sm:$0xff]  }
  0x20   : > { %471 = vmatpush1.bf16.msra.mxu0 %v826_v2  ;;  %v844_v10 = vld [vmem:[%s975_s9 + $0x8] ss:$12 sps:$4 sm:$0xff]   ;;  %v836_v12 = vld [vmem:[%s975_s9 + $0x64] ss:$12 sps:$4 sm:$0xff]   ;;  %v848_v13 = vld [vmem:[%s975_s9 + $0x20] ss:$12 sps:$4 sm:$0xff]  }
  0x21   : > { %472 = vmatprep.subr.bf16.mxu0 %v827_v5  ;;  %v835_v11 = vld [vmem:[%s975_s9 + $0x48] ss:$12 sps:$4 sm:$0xff]   ;;  %759 = vmatpush3.bf16.msra.mxu1 %v844_v10  ;;  %v838_v14 = vld [vmem:[%s975_s9 + $0x60] ss:$12 sps:$4 sm:$0xff]   ;;  %v850_v15 = vld [vmem:[%s975_s9 + $0x38] ss:$12 sps:$4 sm:$0xff]  }
  0x22   : > { %760 = vmatprep.subr.bf16.mxu1 %v907_v3  ;;  %v839_v16 = vld [vmem:[%s975_s9 + $0x7c] ss:$12 sps:$4 sm:$0xff]   ;;  %v841_v17 = vld [vmem:[%s975_s9 + $0x78] ss:$12 sps:$4 sm:$0xff]   ;;  %v842_v19 = vld [vmem:[%s975_s9 + $0x94] ss:$12 sps:$4 sm:$0xff]  }
  0x23   : > { %v851_v18 = vld [vmem:[%s975_s9 + $0x50] ss:$12 sps:$4 sm:$0xff]   ;;  %v852_v21 = vld [vmem:[%s975_s9 + $0x68] ss:$12 sps:$4 sm:$0xff]   ;;  %v846_v22 = vld [vmem:[%s975_s9 + $0xac] ss:$12 sps:$4 sm:$0xff]  }
  0x24   : > { %473 = vmatpush1.bf16.msra.mxu0 %v829_v6  ;;  %v845_v20 = vld [vmem:[%s975_s9 + $0x90] ss:$12 sps:$4 sm:$0xff]   ;;  %v849_v23 = vld [vmem:[%s975_s9 + $0xa8] ss:$12 sps:$4 sm:$0xff]   ;;  %v307_v24 = vld [vmem:[#allocation2] sm:$0x3] }
  0x25   : > { %474 = vmatprep.subr.bf16.mxu0 %v830_v7  ;;  %761 = vmatpush3.bf16.msra.mxu1 %v848_v13  ;;  %v853_v25 = vld [vmem:[%s975_s9 + $0x80] ss:$12 sps:$4 sm:$0xff]   ;;  %v309_v26 = vpack.c.bf16 %v307_v24, %v307_v24  ;;  %v854_v27 = vld [vmem:[%s975_s9 + $0x98] ss:$12 sps:$4 sm:$0xff]   ;;  %v855_v28 = vld [vmem:[%s975_s9 + $0xb0] ss:$12 sps:$4 sm:$0xff]  }
  0x26   : > { %762 = vmatprep.subr.bf16.mxu1 %v907_v3  ;;  %v308_v29 = vld [vmem:[%s980_s19] sm:$0x3f] }
  0x27   : > { %v559_v31 = vrot.slane %v308_v29, 2  ;;  %v746_v46 = vld [vmem:[%s282_s28] ss:$0 sm:$0xff]  ;;  %v577_v49 = vrot.slane %v308_v29, 4 }
  0x28   : > { %475 = vmatpush1.bf16.msra.mxu0 %v832_v8 }
  0x29   : > { %476 = vmatprep.subr.bf16.mxu0 %v833_v9  ;;  %763 = vmatpush3.bf16.msra.mxu1 %v850_v15 }
  0x2a   : > { %764 = vmatprep.subr.bf16.mxu1 %v907_v3 }
  0x2c   : > { %477 = vmatpush1.bf16.msra.mxu0 %v835_v11 }
  0x2d   : > { %478 = vmatprep.subr.bf16.mxu0 %v836_v12  ;;  %765 = vmatpush3.bf16.msra.mxu1 %v851_v18 }
  0x2e   : > { %766 = vmatprep.subr.bf16.mxu1 %v907_v3 }
  0x30   : > { %479 = vmatpush1.bf16.msra.mxu0 %v838_v14 }
  0x31   : > { %480 = vmatprep.subr.bf16.mxu0 %v839_v16  ;;  %767 = vmatpush3.bf16.msra.mxu1 %v852_v21 }
  0x32   : > { %768 = vmatprep.subr.bf16.mxu1 %v907_v3 }
  0x34   : > { %481 = vmatpush1.bf16.msra.mxu0 %v841_v17 }
  0x35   : > { %482 = vmatprep.subr.bf16.mxu0 %v842_v19  ;;  %769 = vmatpush3.bf16.msra.mxu1 %v853_v25 }
  0x36   : > { %770 = vmatprep.subr.bf16.mxu1 %v907_v3 }
  0x38   : > { %483 = vmatpush1.bf16.msra.mxu0 %v845_v20 }
  0x39   : > { %484 = vmatprep.subr.bf16.mxu0 %v846_v22  ;;  %771 = vmatpush3.bf16.msra.mxu1 %v854_v27 }
  0x3a   : > { %772 = vmatprep.subr.bf16.mxu1 %v907_v3 }
  0x3c   : > { %485 = vmatpush1.bf16.msra.mxu0 %v849_v23 }
  0x3d   : > { %773 = vmatpush3.bf16.msra.mxu1 %v855_v28 }
  0x3f   : > { %503 = vmatmul.mubr.bf16.vlgmr.msra.gmra.mrb[0].mxu0 %v309_v26 }
  0x40   : > { %775 = vmatmul.mubr.bf16.vlgmr.msra.gmra.mrb[0].mxu1 %v309_v26 }
 0x112   : > { %v504_v30 = vpop.f32.mrb[0].mxu0 }
 0x113   : > { %v551_v32 = vadd.f32 %v504_v30, %v308_v29  ;;  %v506_v33 = vpop.f32.mrb[1].mxu0  ;;  %v545_v39 = vpop.f32.mrb[0].mxu1 }
 0x114   : > { %v508_v34 = vpop.f32.mrb[2].mxu0  ;;  %v561_v37 = vadd.f32 %v559_v31, %v506_v33  ;;  %v776_v40 = vpop.f32.mrb[1].mxu1  ;;  %v575_v48 = vadd.f32 %v746_v46, %v545_v39 }
 0x115   : > { %v744_v35 = vmul.f32 -1.442695, %v551_v32  ;;  %v509_v36 = vpop.f32.mrb[3].mxu0  ;;  %v548_v41 = vpop.f32.mrb[2].mxu1 }
 0x116   : > { %v745_v38 = vmul.f32 -1.442695, %v561_v37  ;;  %v777_v42 = vpop.f32.mrb[3].mxu1 }
 0x117   : > { %856 = vpow2.f32 %v744_v35 }
 0x118   : > { %858 = vpow2.f32 %v745_v38 }
 0x121   : > { %v857_v43 = vpop.eup %856 }
 0x122   : > { %v555_v44 = vadd.f32 1.0, %v857_v43  ;;  %v859_v45 = vpop.eup %858 }
 0x123   : > { %v565_v47 = vadd.f32 1.0, %v859_v45 }
 0x124   : > { %860 = vrcp.f32 %v555_v44 }
 0x125   : > { %862 = vrcp.f32 %v565_v47 }
 0x12e   : > { %v861_v50 = vpop.eup %860 }
 0x12f   : > { %v576_v51 = vmul.f32 %v861_v50, %v575_v48  ;;  %v863_v53 = vpop.eup %862 }
 0x130   : > { %v581_v54 = vsub.f32 1.0, %v863_v53  ;;  %v583_v56 = vmul.f32 %v863_v53, %v307_v24 }
 0x131   : > { %v579_v52 = vadd.f32 %v577_v49, %v576_v51 }
 0x133   : > { %864 = vtanh.f32 %v579_v52 }
 0x13d   : > { %v865_v55 = vpop.eup %864 }
 0x13e   : > { %v582_v57 = vmul.f32 %v865_v55, %v581_v54 }
 0x140   : > { %v584_v58 = vadd.f32 %v583_v56, %v582_v57 }
 0x142   : > { %585 = vst [vmem:[#allocation2] sm:$0x3] %v584_v58  ;;  %586 = vst [vmem:[%s985_s26] sm:$0x3] %v584_v58 }
 0x143 PF: > { %s13_s16 = sadd.s32 1, %s904_s16   ;;  %s1038_s12 = smov %s896_s14 }
 0x144   : > { %p10_p9 = scmp.ge.s32.totalorder %s13_s16, 10   ;;  %s1039_s13 = smov %s900_s15 }
 0x145   : > { %s1040_s14 = smov %s1043_s17  ;;  %s1041_s15 = smov %s1047_s18 }
 0x146   :  { %12 = sbr.rel (!%p10_p9) target bundleno = 3 (0x3), region = 72 }

</bundles_post_ra>
